<compile_context>
chip_gen: v6e
topology: v6e:2x2x1
jax: 0.10.0
libtpu: 0.0.40
codegen_flags: <defaults>
</compile_context>

<pallas_src>
import functools

import jax
import jax.numpy as jnp
from jax import lax
from jax.experimental import pallas as pl
from jax.experimental.pallas import tpu as pltpu


def _phys_attn_kernel(scale, heads, dim_head, slice_num, tile_n, n_tiles, n_valid,
                      patches_ref, wfx_ref, bfx_ref, wx_ref, bx_ref,
                      wsl_ref, bsl_ref, seg_ref, wq_ref, wk_ref, wv_ref,
                      wo_ref, bo_ref,
                      out_ref,
                      sw_scr, st_scr, norm_scr, p_scr):
    f32 = jnp.float32
    bf16 = jnp.bfloat16
    G = slice_num
    Dh = dim_head
    pp = pl.program_id(1)          # 0 = accumulate pass, 1 = de-slice pass
    t = pl.program_id(2)           # N-tile index

    # ------------- pass 1: projections + per-head slice softmax + slice-token accumulation
    @pl.when(pp == 0)
    def _pass1():
        @pl.when(t == 0)
        def _init():
            st_scr[...] = jnp.zeros_like(st_scr)
            norm_scr[...] = jnp.zeros_like(norm_scr)

        pt = patches_ref[0]                                                   # (tile_n, Ckk) bf16
        fx = jnp.dot(pt, wfx_ref[...], preferred_element_type=f32) + bfx_ref[...]
        xm = jnp.dot(pt, wx_ref[...], preferred_element_type=f32) + bx_ref[...]

        # head-fused slice logits; clamped temperature folded into wsl/bsl by the wrapper
        logits = (jnp.dot(xm.astype(bf16), wsl_ref[...],
                          preferred_element_type=f32) + bsl_ref[...])         # (tile_n, H*G)

        # per-head softmax over G, kept lane-dense on the fused heads*G axis
        mh = jnp.max(logits.reshape(tile_n, heads, G), axis=-1)               # (tile_n, H)
        mfull = lax.dot_general(mh, seg_ref[...], (((1,), (1,)), ((), ())),
                                preferred_element_type=f32)                   # (tile_n, H*G)
        e = jnp.exp(logits - mfull)
        hsum = lax.dot_general(e, seg_ref[...], (((1,), (0,)), ((), ())),
                               preferred_element_type=f32)                    # (tile_n, H)
        denom = lax.dot_general(hsum, seg_ref[...], (((1,), (1,)), ((), ())),
                                preferred_element_type=f32)                   # (tile_n, H*G)
        sw = e * pl.reciprocal(denom, approx=True)

        if n_tiles * tile_n != n_valid:                                       # mask padded mesh points
            row = t * tile_n + lax.broadcasted_iota(jnp.int32, (tile_n, 1), 0)
            sw = jnp.where(row < n_valid, sw, 0.0)

        norm_scr[...] += jnp.sum(sw, axis=0, keepdims=True)                   # slice mass, (1, H*G)

        sw_bf = sw.astype(bf16)
        fx_bf = fx.astype(bf16)
        off = pl.multiple_of(t * tile_n, tile_n)
        sw_scr[pl.ds(off, tile_n), :] = sw_bf                                 # stash for pass 2

        for h in range(heads):
            sw_h = sw_bf[:, h * G:(h + 1) * G]                                # (tile_n, G)
            fx_h = fx_bf[:, h * Dh:(h + 1) * Dh]                              # (tile_n, Dh)
            st_scr[h] += lax.dot_general(fx_h, sw_h, (((0,), (0,)), ((), ())),
                                         preferred_element_type=f32)          # (Dh, G)

        # finalize once per batch: tiny per-head attention among slice tokens, fused with
        # each head's slice of to_out so pass 2 is a single lane-dense matmul.
        @pl.when(t == n_tiles - 1)
        def _finalize():
            for h in range(heads):
                nrm = norm_scr[:, h * G:(h + 1) * G]                          # (1, G)
                stok_t = st_scr[h] * (1.0 / (nrm + 1e-5))                     # (Dh, G)
                q_t = jnp.dot(wq_ref[...], stok_t, preferred_element_type=f32)
                k_t = jnp.dot(wk_ref[...], stok_t, preferred_element_type=f32)
                v_t = jnp.dot(wv_ref[...], stok_t, preferred_element_type=f32)
                dots = lax.dot_general(q_t, k_t, (((0,), (0,)), ((), ())),
                                       preferred_element_type=f32) * scale    # (G, G)
                dots = dots - jnp.max(dots, axis=-1, keepdims=True)
                ae = jnp.exp(dots)
                attn = ae / jnp.sum(ae, axis=-1, keepdims=True)
                # TODO(synk): dropout omitted (p=0.0 / eval mode -> identity)
                osl = lax.dot_general(attn, v_t, (((1,), (1,)), ((), ())),
                                      preferred_element_type=f32)             # (G, Dh)
                p_scr[h * G:(h + 1) * G, :] = jnp.dot(
                    osl, wo_ref[h], preferred_element_type=f32).astype(bf16)  # (G, dim)

    # ------------- pass 2: de-slice + to_out, one lane-dense matmul and store per tile
    @pl.when(pp == 1)
    def _pass2():
        off = pl.multiple_of(t * tile_n, tile_n)
        sw_t = sw_scr[pl.ds(off, tile_n), :]                                  # (tile_n, H*G) bf16
        out = jnp.dot(sw_t, p_scr[...], preferred_element_type=f32) + bo_ref[...]
        out_ref[0] = out.astype(out_ref.dtype)


def physics_attention_forward(x, params, *, H, W, heads, dim_head, slice_num,
                              kernel=3, tile_n=None):
    B, N, C = x.shape
    assert N == H * W
    inner_dim = heads * dim_head
    G = slice_num
    HG = heads * G
    pad = kernel // 2
    Ckk = C * kernel * kernel
    scale = dim_head ** (-0.5)
    f32, bf16 = jnp.float32, jnp.bfloat16

    if tile_n is None:
        tile_n = min(512, N)
    tile_n = min(tile_n, N)
    if tile_n % 8 != 0 and tile_n != N:
        tile_n = max(8, (tile_n // 8) * 8)
    n_tiles = -(-N // tile_n)
    n_pad = n_tiles * tile_n

    # ---- glue: im2col patches (zero 'same' padding), channel order (ic, dy, dx), bf16
    x_img = x.reshape(B, H, W, C)
    xp = jnp.pad(x_img, ((0, 0), (pad, pad), (pad, pad), (0, 0)))
    cols = []
    for di in range(kernel):
        for dj in range(kernel):
            cols.append(lax.dynamic_slice(xp, (0, di, dj, 0), (B, H, W, C)))
    patches = jnp.stack(cols, axis=-1).reshape(B, N, Ckk)
    if n_pad != N:
        patches = jnp.pad(patches, ((0, 0), (0, n_pad - N), (0, 0)))
    patches = patches.astype(bf16)

    # ---- glue: head-fused / pre-transposed parameters
    def conv_w_to_mat(w):                                   # (inner, C, kh, kw) -> (Ckk, inner)
        return jnp.transpose(w, (1, 2, 3, 0)).reshape(Ckk, inner_dim)

    wfx = conv_w_to_mat(params['w_fx']).astype(bf16)
    wx = conv_w_to_mat(params['w_x']).astype(bf16)
    bfx = params['b_fx'].reshape(1, inner_dim).astype(f32)
    bx = params['b_x'].reshape(1, inner_dim).astype(f32)

    # block-diagonal slice projection with the clamped per-head temperature folded in
    temp = jnp.clip(params['temperature'].reshape(heads), 0.1, 5.0)
    inv_t = (1.0 / temp).astype(f32)                                          # (heads,)
    wsl_t = params['w_slice'].T.astype(f32)                                   # (Dh, G)
    eyeh = jnp.eye(heads, dtype=f32)
    wsl_bd = jnp.einsum('ij,dg->idjg', eyeh, wsl_t).reshape(inner_dim, HG)
    wsl_bd = (wsl_bd * jnp.repeat(inv_t, G)[None, :]).astype(bf16)
    bsl = (jnp.tile(params['b_slice'].astype(f32), heads)
           * jnp.repeat(inv_t, G)).reshape(1, HG)

    seg = jnp.repeat(jnp.eye(heads, dtype=f32), G, axis=0)                    # (H*G, heads)

    wq = params['w_q'].astype(f32)                                            # (Dh, Dh), PyTorch layout
    wk = params['w_k'].astype(f32)
    wv = params['w_v'].astype(f32)
    wo = params['w_out'].T.reshape(heads, dim_head, C).astype(f32)            # per-head (Dh, dim)
    bo = params['b_out'].reshape(1, C).astype(f32)

    grid = (B, 2, n_tiles)
    last = n_tiles - 1

    in_specs = [
        # patch tiles stream in pass 0 and stay parked on the last tile in pass 1 (no re-DMA)
        pl.BlockSpec((1, tile_n, Ckk), lambda b, p, t: (b, t * (1 - p) + last * p, 0)),
        pl.BlockSpec((Ckk, inner_dim), lambda b, p, t: (0, 0)),     # wfx
        pl.BlockSpec((1, inner_dim), lambda b, p, t: (0, 0)),       # bfx
        pl.BlockSpec((Ckk, inner_dim), lambda b, p, t: (0, 0)),     # wx
        pl.BlockSpec((1, inner_dim), lambda b, p, t: (0, 0)),       # bx
        pl.BlockSpec((inner_dim, HG), lambda b, p, t: (0, 0)),      # block-diag w_slice (temp folded)
        pl.BlockSpec((1, HG), lambda b, p, t: (0, 0)),              # b_slice (temp folded)
        pl.BlockSpec((HG, heads), lambda b, p, t: (0, 0)),          # head segment matrix
        pl.BlockSpec((dim_head, dim_head), lambda b, p, t: (0, 0)), # wq
        pl.BlockSpec((dim_head, dim_head), lambda b, p, t: (0, 0)), # wk
        pl.BlockSpec((dim_head, dim_head), lambda b, p, t: (0, 0)), # wv
        pl.BlockSpec((heads, dim_head, C), lambda b, p, t: (0, 0, 0)),  # w_out^T per head
        pl.BlockSpec((1, C), lambda b, p, t: (0, 0)),               # b_out
    ]
    out_specs = pl.BlockSpec((1, tile_n, C), lambda b, p, t: (b, t * p, 0))

    flops = 2 * B * n_pad * Ckk * inner_dim * 2          # two conv projections
    flops += 2 * B * n_pad * inner_dim * HG              # slice logits
    flops += 2 * B * n_pad * HG * (dim_head + C)         # slice-token accumulation + de-slice
    cost = pl.CostEstimate(
        flops=int(flops),
        transcendentals=int(B * n_pad * HG + B * heads * G * G),
        bytes_accessed=int(B * n_pad * (Ckk * 2 + C * 4)
                           + 2 * Ckk * inner_dim * 2 + inner_dim * HG * 2))

    out = pl.pallas_call(
        functools.partial(_phys_attn_kernel, scale, heads, dim_head, slice_num,
                          tile_n, n_tiles, N),
        out_shape=jax.ShapeDtypeStruct((B, n_pad, C), f32),
        grid=grid,
        in_specs=in_specs,
        out_specs=out_specs,
        scratch_shapes=[
            pltpu.VMEM((n_pad, HG), bf16),              # slice weights (all N tiles, reused in pass 2)
            pltpu.VMEM((heads, dim_head, G), f32),      # slice-token numerator (transposed)
            pltpu.VMEM((1, HG), f32),                   # slice mass
            pltpu.VMEM((HG, C), bf16),                  # per-head (out_slice @ to_out_h), stacked
        ],
        compiler_params=pltpu.CompilerParams(
            dimension_semantics=("parallel", "arbitrary", "arbitrary"),
            vmem_limit_bytes=48 * 1024 * 1024),
        cost_estimate=cost,
    )(patches, wfx, bfx, wx, bx, wsl_bd, bsl, seg, wq, wk, wv, wo, bo)

    return out[:, :N, :]


def reference_forward(x, params, *, H, W, heads, dim_head, slice_num, kernel):
    """Pure-JAX reference mirroring the PyTorch forward semantics."""
    B, N, C = x.shape
    inner_dim = heads * dim_head
    x_img = x.reshape(B, H, W, C)

    def conv(img, w, b):  # w: (out, in, kh, kw) PyTorch layout
        out = lax.conv_general_dilated(
            img, jnp.transpose(w, (2, 3, 1, 0)), (1, 1), 'SAME',
            dimension_numbers=('NHWC', 'HWIO', 'NHWC'))
        return out + b

    fx = conv(x_img, params['w_fx'], params['b_fx'])
    xm = conv(x_img, params['w_x'], params['b_x'])
    fx_mid = fx.reshape(B, N, heads, dim_head).transpose(0, 2, 1, 3)
    x_mid = xm.reshape(B, N, heads, dim_head).transpose(0, 2, 1, 3)

    temp = jnp.clip(params['temperature'], 0.1, 5.0)
    logits = (jnp.einsum('bhnd,gd->bhng', x_mid, params['w_slice'])
              + params['b_slice']) / temp
    sw = jax.nn.softmax(logits, axis=-1)
    slice_norm = sw.sum(axis=2)
    slice_token = jnp.einsum('bhnc,bhng->bhgc', fx_mid, sw)
    slice_token = slice_token / (slice_norm + 1e-5)[..., None]

    q = jnp.einsum('bhgc,dc->bhgd', slice_token, params['w_q'])
    k = jnp.einsum('bhgc,dc->bhgd', slice_token, params['w_k'])
    v = jnp.einsum('bhgc,dc->bhgd', slice_token, params['w_v'])

    dots = jnp.einsum('bhgd,bhkd->bhgk', q, k) * (dim_head ** (-0.5))
    attn = jax.nn.softmax(dots, axis=-1)
    out_slice = jnp.einsum('bhgk,bhkd->bhgd', attn, v)
    out_x = jnp.einsum('bhgc,bhng->bhnc', out_slice, sw)
    out_x = out_x.transpose(0, 2, 1, 3).reshape(B, N, inner_dim)
    return jnp.einsum('bnd,od->bno', out_x, params['w_out']) + params['b_out']


if __name__ == "__main__":
    # Small shapes consistent with the module's forward (x: (B, N=H*W, dim)).
    B, dim = 2, 8
    heads, dim_head = 2, 16
    slice_num = 8
    H, W, kernel = 16, 8, 3
    N = H * W
    inner_dim = heads * dim_head

    key = jax.random.PRNGKey(0)
    ks = jax.random.split(key, 12)
    params = {
        'w_fx': jax.random.normal(ks[0], (inner_dim, dim, kernel, kernel), jnp.float32) * 0.1,
        'b_fx': jax.random.normal(ks[1], (inner_dim,), jnp.float32) * 0.1,
        'w_x': jax.random.normal(ks[2], (inner_dim, dim, kernel, kernel), jnp.float32) * 0.1,
        'b_x': jax.random.normal(ks[3], (inner_dim,), jnp.float32) * 0.1,
        'w_slice': jax.random.normal(ks[4], (slice_num, dim_head), jnp.float32) * 0.3,
        'b_slice': jax.random.normal(ks[5], (slice_num,), jnp.float32) * 0.1,
        'w_q': jax.random.normal(ks[6], (dim_head, dim_head), jnp.float32) * 0.2,
        'w_k': jax.random.normal(ks[7], (dim_head, dim_head), jnp.float32) * 0.2,
        'w_v': jax.random.normal(ks[8], (dim_head, dim_head), jnp.float32) * 0.2,
        'w_out': jax.random.normal(ks[9], (dim, inner_dim), jnp.float32) * 0.1,
        'b_out': jax.random.normal(ks[10], (dim,), jnp.float32) * 0.1,
        'temperature': jnp.ones((1, heads, 1, 1), jnp.float32) * 0.5,
    }
    x = jax.random.normal(ks[11], (B, N, dim), jnp.float32)

    out = physics_attention_forward(
        x, params, H=H, W=W, heads=heads, dim_head=dim_head,
        slice_num=slice_num, kernel=kernel, tile_n=32)
    out = jax.block_until_ready(out)

    ref = reference_forward(
        x, params, H=H, W=W, heads=heads, dim_head=dim_head,
        slice_num=slice_num, kernel=kernel)
    ref = jax.block_until_ready(ref)

    assert out.shape == (B, N, dim)
    max_err = float(jnp.max(jnp.abs(out - ref)))
    rel_err = float(jnp.linalg.norm(out - ref) / (jnp.linalg.norm(ref) + 1e-12))
    # bf16 matmul inputs (f32 accumulation) -> looser tolerance than a pure-f32 kernel
    assert max_err < 5e-2 and rel_err < 2e-2, (
        f"max abs err {max_err}, rel l2 err {rel_err}")
    print("KERNEL_OK")
</pallas_src>

<mosaic_0001>
module attributes {stable_mosaic.version = 11 : i64} {
  func.func @_phys_attn_kernel(%arg0: i32, %arg1: i32, %arg2: i32, %arg3: memref<1x32x72xbf16, #tpu.memory_space<vmem>>, %arg4: memref<72x32xbf16, #tpu.memory_space<vmem>>, %arg5: memref<1x32xf32, #tpu.memory_space<vmem>>, %arg6: memref<72x32xbf16, #tpu.memory_space<vmem>>, %arg7: memref<1x32xf32, #tpu.memory_space<vmem>>, %arg8: memref<32x16xbf16, #tpu.memory_space<vmem>>, %arg9: memref<1x16xf32, #tpu.memory_space<vmem>>, %arg10: memref<16x2xf32, #tpu.memory_space<vmem>>, %arg11: memref<16x16xf32, #tpu.memory_space<vmem>>, %arg12: memref<16x16xf32, #tpu.memory_space<vmem>>, %arg13: memref<16x16xf32, #tpu.memory_space<vmem>>, %arg14: memref<2x16x8xf32, #tpu.memory_space<vmem>>, %arg15: memref<1x8xf32, #tpu.memory_space<vmem>>, %arg16: memref<1x32x8xf32, #tpu.memory_space<vmem>>, %arg17: memref<128x16xbf16, #tpu.memory_space<vmem>>, %arg18: memref<2x16x8xf32, #tpu.memory_space<vmem>>, %arg19: memref<1x16xf32, #tpu.memory_space<vmem>>, %arg20: memref<16x8xbf16, #tpu.memory_space<vmem>>) attributes {dimension_semantics = [#tpu.dimension_semantics<parallel>, #tpu.dimension_semantics<arbitrary>, #tpu.dimension_semantics<arbitrary>], iteration_bounds = array<i64: 2, 2, 4>, scalar_prefetch = 0 : i64, scratch_operands = 4 : i64, tpu.core_type = #tpu.core_type<tc>, window_params = [{transform_indices = @transform_0, window_bounds = array<i64: 1, 32, 72>}, {pipeline_mode = #tpu.pipeline_mode<synchronous>, transform_indices = @transform_1, window_bounds = array<i64: 72, 32>}, {pipeline_mode = #tpu.pipeline_mode<synchronous>, transform_indices = @transform_2, window_bounds = array<i64: 1, 32>}, {pipeline_mode = #tpu.pipeline_mode<synchronous>, transform_indices = @transform_3, window_bounds = array<i64: 72, 32>}, {pipeline_mode = #tpu.pipeline_mode<synchronous>, transform_indices = @transform_4, window_bounds = array<i64: 1, 32>}, {pipeline_mode = #tpu.pipeline_mode<synchronous>, transform_indices = @transform_5, window_bounds = array<i64: 32, 16>}, {pipeline_mode = #tpu.pipeline_mode<synchronous>, transform_indices = @transform_6, window_bounds = array<i64: 1, 16>}, {pipeline_mode = #tpu.pipeline_mode<synchronous>, transform_indices = @transform_7, window_bounds = array<i64: 16, 2>}, {pipeline_mode = #tpu.pipeline_mode<synchronous>, transform_indices = @transform_8, window_bounds = array<i64: 16, 16>}, {pipeline_mode = #tpu.pipeline_mode<synchronous>, transform_indices = @transform_9, window_bounds = array<i64: 16, 16>}, {pipeline_mode = #tpu.pipeline_mode<synchronous>, transform_indices = @transform_10, window_bounds = array<i64: 16, 16>}, {pipeline_mode = #tpu.pipeline_mode<synchronous>, transform_indices = @transform_11, window_bounds = array<i64: 2, 16, 8>}, {pipeline_mode = #tpu.pipeline_mode<synchronous>, transform_indices = @transform_12, window_bounds = array<i64: 1, 8>}, {transform_indices = @transform_13, window_bounds = array<i64: 1, 32, 8>}]} {
    %c0_i32 = arith.constant 0 : i32
    %0 = arith.cmpi eq, %arg1, %c0_i32 : i32
    %1 = arith.extui %0 : i1 to i32
    %c0_i32_0 = arith.constant 0 : i32
    %2 = arith.cmpi ne, %1, %c0_i32_0 : i32
    scf.if %2 {
      %c0_i32_2 = arith.constant 0 : i32
      %6 = arith.cmpi eq, %arg2, %c0_i32_2 : i32
      %7 = arith.extui %6 : i1 to i32
      %c0_i32_3 = arith.constant 0 : i32
      %8 = arith.cmpi ne, %7, %c0_i32_3 : i32
      scf.if %8 {
        %cst_50 = arith.constant 0.000000e+00 : f32
        %71 = vector.broadcast %cst_50 : f32 to vector<2x16x8xf32>
        %c0_51 = arith.constant 0 : index
        %c0_52 = arith.constant 0 : index
        %c0_53 = arith.constant 0 : index
        %72 = vector.load %arg18[%c0_51, %c0_52, %c0_53] : memref<2x16x8xf32, #tpu.memory_space<vmem>>, vector<2x16x8xf32>
        tpu.vector_store %arg18[%c0_51, %c0_52, %c0_53], %71 {strides = array<i32>} : memref<2x16x8xf32, #tpu.memory_space<vmem>>, vector<2x16x8xf32>,
        %cst_54 = arith.constant 0.000000e+00 : f32
        %73 = vector.broadcast %cst_54 : f32 to vector<1x16xf32>
        %c0_55 = arith.constant 0 : index
        %c0_56 = arith.constant 0 : index
        %74 = vector.load %arg19[%c0_55, %c0_56] : memref<1x16xf32, #tpu.memory_space<vmem>>, vector<1x16xf32>
        tpu.vector_store %arg19[%c0_55, %c0_56], %73 {strides = array<i32>} : memref<1x16xf32, #tpu.memory_space<vmem>>, vector<1x16xf32>,
      } else {
      }
      %c0 = arith.constant 0 : index
      %c0_4 = arith.constant 0 : index
      %c0_5 = arith.constant 0 : index
      %9 = vector.load %arg3[%c0, %c0_4, %c0_5] : memref<1x32x72xbf16, #tpu.memory_space<vmem>>, vector<1x32x72xbf16>
      %10 = vector.shape_cast %9 : vector<1x32x72xbf16> to vector<32x72xbf16>
      %c0_6 = arith.constant 0 : index
      %c0_7 = arith.constant 0 : index
      %11 = vector.load %arg4[%c0_6, %c0_7] : memref<72x32xbf16, #tpu.memory_space<vmem>>, vector<72x32xbf16>
      %cst = arith.constant dense<0.000000e+00> : vector<32x32xf32>
      %12 = tpu.matmul %10, %11, %cst {dimension_numbers = #tpu.dot_dimension_numbers<[1], [0], [0], [1], [0, 0, 1, 1], [], []>} : vector<32x72xbf16>, vector<72x32xbf16>, vector<32x32xf32> -> vector<32x32xf32>
      %c0_8 = arith.constant 0 : index
      %c0_9 = arith.constant 0 : index
      %13 = vector.load %arg5[%c0_8, %c0_9] : memref<1x32xf32, #tpu.memory_space<vmem>>, vector<1x32xf32>
      %14 = vector.broadcast %13 : vector<1x32xf32> to vector<32x32xf32>
      %15 = arith.addf %12, %14 : vector<32x32xf32>
      %c0_10 = arith.constant 0 : index
      %c0_11 = arith.constant 0 : index
      %16 = vector.load %arg6[%c0_10, %c0_11] : memref<72x32xbf16, #tpu.memory_space<vmem>>, vector<72x32xbf16>
      %cst_12 = arith.constant dense<0.000000e+00> : vector<32x32xf32>
      %17 = tpu.matmul %10, %16, %cst_12 {dimension_numbers = #tpu.dot_dimension_numbers<[1], [0], [0], [1], [0, 0, 1, 1], [], []>} : vector<32x72xbf16>, vector<72x32xbf16>, vector<32x32xf32> -> vector<32x32xf32>
      %c0_13 = arith.constant 0 : index
      %c0_14 = arith.constant 0 : index
      %18 = vector.load %arg7[%c0_13, %c0_14] : memref<1x32xf32, #tpu.memory_space<vmem>>, vector<1x32xf32>
      %19 = vector.broadcast %18 : vector<1x32xf32> to vector<32x32xf32>
      %20 = arith.addf %17, %19 : vector<32x32xf32>
      %21 = arith.truncf %20 : vector<32x32xf32> to vector<32x32xbf16>
      %c0_15 = arith.constant 0 : index
      %c0_16 = arith.constant 0 : index
      %22 = vector.load %arg8[%c0_15, %c0_16] : memref<32x16xbf16, #tpu.memory_space<vmem>>, vector<32x16xbf16>
      %cst_17 = arith.constant dense<0.000000e+00> : vector<32x16xf32>
      %23 = tpu.matmul %21, %22, %cst_17 {dimension_numbers = #tpu.dot_dimension_numbers<[1], [0], [0], [1], [0, 0, 1, 1], [], []>} : vector<32x32xbf16>, vector<32x16xbf16>, vector<32x16xf32> -> vector<32x16xf32>
      %c0_18 = arith.constant 0 : index
      %c0_19 = arith.constant 0 : index
      %24 = vector.load %arg9[%c0_18, %c0_19] : memref<1x16xf32, #tpu.memory_space<vmem>>, vector<1x16xf32>
      %25 = vector.broadcast %24 : vector<1x16xf32> to vector<32x16xf32>
      %26 = arith.addf %23, %25 : vector<32x16xf32>
      %27 = vector.shape_cast %26 : vector<32x16xf32> to vector<32x2x8xf32>
      %cst_20 = arith.constant dense<0xFF800000> : vector<32x2xf32>
      %28 = vector.multi_reduction <maximumf>, %27, %cst_20 [2] : vector<32x2x8xf32> to vector<32x2xf32>
      %c0_21 = arith.constant 0 : index
      %c0_22 = arith.constant 0 : index
      %29 = vector.load %arg10[%c0_21, %c0_22] : memref<16x2xf32, #tpu.memory_space<vmem>>, vector<16x2xf32>
      %cst_23 = arith.constant dense<0.000000e+00> : vector<32x16xf32>
      %30 = tpu.matmul %28, %29, %cst_23 {dimension_numbers = #tpu.dot_dimension_numbers<[1], [1], [0], [0], [0, 0, 1, 0], [], []>} : vector<32x2xf32>, vector<16x2xf32>, vector<32x16xf32> -> vector<32x16xf32>
      %31 = arith.subf %26, %30 : vector<32x16xf32>
      %32 = math.exp %31 : vector<32x16xf32>
      %c0_24 = arith.constant 0 : index
      %c0_25 = arith.constant 0 : index
      %33 = vector.load %arg10[%c0_24, %c0_25] : memref<16x2xf32, #tpu.memory_space<vmem>>, vector<16x2xf32>
      %cst_26 = arith.constant dense<0.000000e+00> : vector<32x2xf32>
      %34 = tpu.matmul %32, %33, %cst_26 {dimension_numbers = #tpu.dot_dimension_numbers<[1], [0], [0], [1], [0, 0, 1, 1], [], []>} : vector<32x16xf32>, vector<16x2xf32>, vector<32x2xf32> -> vector<32x2xf32>
      %c0_27 = arith.constant 0 : index
      %c0_28 = arith.constant 0 : index
      %35 = vector.load %arg10[%c0_27, %c0_28] : memref<16x2xf32, #tpu.memory_space<vmem>>, vector<16x2xf32>
      %cst_29 = arith.constant dense<0.000000e+00> : vector<32x16xf32>
      %36 = tpu.matmul %34, %35, %cst_29 {dimension_numbers = #tpu.dot_dimension_numbers<[1], [1], [0], [0], [0, 0, 1, 0], [], []>} : vector<32x2xf32>, vector<16x2xf32>, vector<32x16xf32> -> vector<32x16xf32>
      %37 = tpu.reciprocal %36 {approx = true} : vector<32x16xf32> -> vector<32x16xf32>
      %38 = arith.mulf %32, %37 : vector<32x16xf32>
      %c0_30 = arith.constant 0 : index
      %c0_31 = arith.constant 0 : index
      %39 = vector.load %arg19[%c0_30, %c0_31] : memref<1x16xf32, #tpu.memory_space<vmem>>, vector<1x16xf32>
      %cst_32 = arith.constant dense<0.000000e+00> : vector<16xf32>
      %40 = vector.multi_reduction <add>, %38, %cst_32 [0] : vector<32x16xf32> to vector<16xf32>
      %41 = vector.shape_cast %40 : vector<16xf32> to vector<1x16xf32>
      %42 = arith.addf %39, %41 : vector<1x16xf32>
      %c0_33 = arith.constant 0 : index
      %c0_34 = arith.constant 0 : index
      %43 = vector.load %arg19[%c0_33, %c0_34] : memref<1x16xf32, #tpu.memory_space<vmem>>, vector<1x16xf32>
      tpu.vector_store %arg19[%c0_33, %c0_34], %42 {strides = array<i32>} : memref<1x16xf32, #tpu.memory_space<vmem>>, vector<1x16xf32>,
      %44 = arith.truncf %38 : vector<32x16xf32> to vector<32x16xbf16>
      %45 = arith.truncf %15 : vector<32x32xf32> to vector<32x32xbf16>
      %c32_i32 = arith.constant 32 : i32
      %46 = arith.muli %arg2, %c32_i32 : i32
      %47 = tpu.assume_multiple %46, 32 : i32
      %48 = arith.index_cast %47 : i32 to index
      %c0_35 = arith.constant 0 : index
      %49 = vector.load %arg17[%48, %c0_35] : memref<128x16xbf16, #tpu.memory_space<vmem>>, vector<32x16xbf16>
      tpu.vector_store %arg17[%48, %c0_35], %44 {strides = array<i32>} : memref<128x16xbf16, #tpu.memory_space<vmem>>, vector<32x16xbf16>,
      %50 = vector.extract_strided_slice %44 {offsets = [0, 0], sizes = [32, 8], strides = [1, 1]} : vector<32x16xbf16> to vector<32x8xbf16>
      %51 = vector.extract_strided_slice %45 {offsets = [0, 0], sizes = [32, 16], strides = [1, 1]} : vector<32x32xbf16> to vector<32x16xbf16>
      %c0_36 = arith.constant 0 : index
      %c0_37 = arith.constant 0 : index
      %c0_38 = arith.constant 0 : index
      %52 = vector.load %arg18[%c0_36, %c0_37, %c0_38] : memref<2x16x8xf32, #tpu.memory_space<vmem>>, vector<1x16x8xf32>
      %53 = vector.shape_cast %52 : vector<1x16x8xf32> to vector<16x8xf32>
      %cst_39 = arith.constant dense<0.000000e+00> : vector<16x8xf32>
      %54 = tpu.matmul %51, %50, %cst_39 {dimension_numbers = #tpu.dot_dimension_numbers<[0], [0], [1], [1], [0, 1, 1, 1], [], []>} : vector<32x16xbf16>, vector<32x8xbf16>, vector<16x8xf32> -> vector<16x8xf32>
      %55 = arith.addf %53, %54 : vector<16x8xf32>
      %c0_40 = arith.constant 0 : index
      %c0_41 = arith.constant 0 : index
      %c0_42 = arith.constant 0 : index
      %56 = vector.load %arg18[%c0_40, %c0_41, %c0_42] : memref<2x16x8xf32, #tpu.memory_space<vmem>>, vector<1x16x8xf32>
      %57 = vector.shape_cast %56 : vector<1x16x8xf32> to vector<16x8xf32>
      %58 = vector.shape_cast %55 : vector<16x8xf32> to vector<1x16x8xf32>
      tpu.vector_store %arg18[%c0_40, %c0_41, %c0_42], %58 {strides = array<i32>} : memref<2x16x8xf32, #tpu.memory_space<vmem>>, vector<1x16x8xf32>,
      %59 = vector.extract_strided_slice %44 {offsets = [0, 8], sizes = [32, 8], strides = [1, 1]} : vector<32x16xbf16> to vector<32x8xbf16>
      %60 = vector.extract_strided_slice %45 {offsets = [0, 16], sizes = [32, 16], strides = [1, 1]} : vector<32x32xbf16> to vector<32x16xbf16>
      %c1 = arith.constant 1 : index
      %c0_43 = arith.constant 0 : index
      %c0_44 = arith.constant 0 : index
      %61 = vector.load %arg18[%c1, %c0_43, %c0_44] : memref<2x16x8xf32, #tpu.memory_space<vmem>>, vector<1x16x8xf32>
      %62 = vector.shape_cast %61 : vector<1x16x8xf32> to vector<16x8xf32>
      %cst_45 = arith.constant dense<0.000000e+00> : vector<16x8xf32>
      %63 = tpu.matmul %60, %59, %cst_45 {dimension_numbers = #tpu.dot_dimension_numbers<[0], [0], [1], [1], [0, 1, 1, 1], [], []>} : vector<32x16xbf16>, vector<32x8xbf16>, vector<16x8xf32> -> vector<16x8xf32>
      %64 = arith.addf %62, %63 : vector<16x8xf32>
      %c1_46 = arith.constant 1 : index
      %c0_47 = arith.constant 0 : index
      %c0_48 = arith.constant 0 : index
      %65 = vector.load %arg18[%c1_46, %c0_47, %c0_48] : memref<2x16x8xf32, #tpu.memory_space<vmem>>, vector<1x16x8xf32>
      %66 = vector.shape_cast %65 : vector<1x16x8xf32> to vector<16x8xf32>
      %67 = vector.shape_cast %64 : vector<16x8xf32> to vector<1x16x8xf32>
      tpu.vector_store %arg18[%c1_46, %c0_47, %c0_48], %67 {strides = array<i32>} : memref<2x16x8xf32, #tpu.memory_space<vmem>>, vector<1x16x8xf32>,
      %c3_i32 = arith.constant 3 : i32
      %68 = arith.cmpi eq, %arg2, %c3_i32 : i32
      %69 = arith.extui %68 : i1 to i32
      %c0_i32_49 = arith.constant 0 : i32
      %70 = arith.cmpi ne, %69, %c0_i32_49 : i32
      scf.if %70 {
        %c0_50 = arith.constant 0 : index
        %c0_51 = arith.constant 0 : index
        %71 = vector.load %arg19[%c0_50, %c0_51] : memref<1x16xf32, #tpu.memory_space<vmem>>, vector<1x8xf32>
        %c0_52 = arith.constant 0 : index
        %c0_53 = arith.constant 0 : index
        %c0_54 = arith.constant 0 : index
        %72 = vector.load %arg18[%c0_52, %c0_53, %c0_54] : memref<2x16x8xf32, #tpu.memory_space<vmem>>, vector<1x16x8xf32>
        %73 = vector.shape_cast %72 : vector<1x16x8xf32> to vector<16x8xf32>
        %cst_55 = arith.constant 9.99999974E-6 : f32
        %74 = vector.broadcast %cst_55 : f32 to vector<1x8xf32>
        %75 = arith.addf %71, %74 : vector<1x8xf32>
        %cst_56 = arith.constant 1.000000e+00 : f32
        %76 = vector.broadcast %cst_56 : f32 to vector<1x8xf32>
        %77 = arith.divf %76, %75 : vector<1x8xf32>
        %78 = vector.broadcast %77 : vector<1x8xf32> to vector<16x8xf32>
        %79 = arith.mulf %73, %78 : vector<16x8xf32>
        %c0_57 = arith.constant 0 : index
        %c0_58 = arith.constant 0 : index
        %80 = vector.load %arg11[%c0_57, %c0_58] : memref<16x16xf32, #tpu.memory_space<vmem>>, vector<16x16xf32>
        %cst_59 = arith.constant dense<0.000000e+00> : vector<16x8xf32>
        %81 = tpu.matmul %80, %79, %cst_59 {dimension_numbers = #tpu.dot_dimension_numbers<[1], [0], [0], [1], [0, 0, 1, 1], [], []>} : vector<16x16xf32>, vector<16x8xf32>, vector<16x8xf32> -> vector<16x8xf32>
        %c0_60 = arith.constant 0 : index
        %c0_61 = arith.constant 0 : index
        %82 = vector.load %arg12[%c0_60, %c0_61] : memref<16x16xf32, #tpu.memory_space<vmem>>, vector<16x16xf32>
        %cst_62 = arith.constant dense<0.000000e+00> : vector<16x8xf32>
        %83 = tpu.matmul %82, %79, %cst_62 {dimension_numbers = #tpu.dot_dimension_numbers<[1], [0], [0], [1], [0, 0, 1, 1], [], []>} : vector<16x16xf32>, vector<16x8xf32>, vector<16x8xf32> -> vector<16x8xf32>
        %c0_63 = arith.constant 0 : index
        %c0_64 = arith.constant 0 : index
        %84 = vector.load %arg13[%c0_63, %c0_64] : memref<16x16xf32, #tpu.memory_space<vmem>>, vector<16x16xf32>
        %cst_65 = arith.constant dense<0.000000e+00> : vector<16x8xf32>
        %85 = tpu.matmul %84, %79, %cst_65 {dimension_numbers = #tpu.dot_dimension_numbers<[1], [0], [0], [1], [0, 0, 1, 1], [], []>} : vector<16x16xf32>, vector<16x8xf32>, vector<16x8xf32> -> vector<16x8xf32>
        %cst_66 = arith.constant dense<0.000000e+00> : vector<8x8xf32>
        %86 = tpu.matmul %81, %83, %cst_66 {dimension_numbers = #tpu.dot_dimension_numbers<[0], [0], [1], [1], [0, 1, 1, 1], [], []>} : vector<16x8xf32>, vector<16x8xf32>, vector<8x8xf32> -> vector<8x8xf32>
        %cst_67 = arith.constant 2.500000e-01 : f32
        %87 = vector.broadcast %cst_67 : f32 to vector<8x8xf32>
        %88 = arith.mulf %86, %87 : vector<8x8xf32>
        %cst_68 = arith.constant dense<0xFF800000> : vector<8xf32>
        %89 = vector.multi_reduction <maximumf>, %88, %cst_68 [1] : vector<8x8xf32> to vector<8xf32>
        %90 = vector.shape_cast %89 : vector<8xf32> to vector<8x1xf32>
        %91 = vector.broadcast %90 : vector<8x1xf32> to vector<8x8xf32>
        %92 = arith.subf %88, %91 : vector<8x8xf32>
        %93 = math.exp %92 : vector<8x8xf32>
        %cst_69 = arith.constant dense<0.000000e+00> : vector<8xf32>
        %94 = vector.multi_reduction <add>, %93, %cst_69 [1] : vector<8x8xf32> to vector<8xf32>
        %95 = vector.shape_cast %94 : vector<8xf32> to vector<8x1xf32>
        %96 = vector.broadcast %95 : vector<8x1xf32> to vector<8x8xf32>
        %97 = arith.divf %93, %96 : vector<8x8xf32>
        %cst_70 = arith.constant dense<0.000000e+00> : vector<8x16xf32>
        %98 = tpu.matmul %97, %85, %cst_70 {dimension_numbers = #tpu.dot_dimension_numbers<[1], [1], [0], [0], [0, 0, 1, 0], [], []>} : vector<8x8xf32>, vector<16x8xf32>, vector<8x16xf32> -> vector<8x16xf32>
        %c0_71 = arith.constant 0 : index
        %c0_72 = arith.constant 0 : index
        %c0_73 = arith.constant 0 : index
        %99 = vector.load %arg14[%c0_71, %c0_72, %c0_73] : memref<2x16x8xf32, #tpu.memory_space<vmem>>, vector<1x16x8xf32>
        %100 = vector.shape_cast %99 : vector<1x16x8xf32> to vector<16x8xf32>
        %cst_74 = arith.constant dense<0.000000e+00> : vector<8x8xf32>
        %101 = tpu.matmul %98, %100, %cst_74 {dimension_numbers = #tpu.dot_dimension_numbers<[1], [0], [0], [1], [0, 0, 1, 1], [], []>} : vector<8x16xf32>, vector<16x8xf32>, vector<8x8xf32> -> vector<8x8xf32>
        %102 = arith.truncf %101 : vector<8x8xf32> to vector<8x8xbf16>
        %c0_75 = arith.constant 0 : index
        %c0_76 = arith.constant 0 : index
        %103 = vector.load %arg20[%c0_75, %c0_76] : memref<16x8xbf16, #tpu.memory_space<vmem>>, vector<8x8xbf16>
        tpu.vector_store %arg20[%c0_75, %c0_76], %102 {strides = array<i32>} : memref<16x8xbf16, #tpu.memory_space<vmem>>, vector<8x8xbf16>,
        %c0_77 = arith.constant 0 : index
        %c8 = arith.constant 8 : index
        %104 = vector.load %arg19[%c0_77, %c8] : memref<1x16xf32, #tpu.memory_space<vmem>>, vector<1x8xf32>
        %c1_78 = arith.constant 1 : index
        %c0_79 = arith.constant 0 : index
        %c0_80 = arith.constant 0 : index
        %105 = vector.load %arg18[%c1_78, %c0_79, %c0_80] : memref<2x16x8xf32, #tpu.memory_space<vmem>>, vector<1x16x8xf32>
        %106 = vector.shape_cast %105 : vector<1x16x8xf32> to vector<16x8xf32>
        %cst_81 = arith.constant 9.99999974E-6 : f32
        %107 = vector.broadcast %cst_81 : f32 to vector<1x8xf32>
        %108 = arith.addf %104, %107 : vector<1x8xf32>
        %cst_82 = arith.constant 1.000000e+00 : f32
        %109 = vector.broadcast %cst_82 : f32 to vector<1x8xf32>
        %110 = arith.divf %109, %108 : vector<1x8xf32>
        %111 = vector.broadcast %110 : vector<1x8xf32> to vector<16x8xf32>
        %112 = arith.mulf %106, %111 : vector<16x8xf32>
        %c0_83 = arith.constant 0 : index
        %c0_84 = arith.constant 0 : index
        %113 = vector.load %arg11[%c0_83, %c0_84] : memref<16x16xf32, #tpu.memory_space<vmem>>, vector<16x16xf32>
        %cst_85 = arith.constant dense<0.000000e+00> : vector<16x8xf32>
        %114 = tpu.matmul %113, %112, %cst_85 {dimension_numbers = #tpu.dot_dimension_numbers<[1], [0], [0], [1], [0, 0, 1, 1], [], []>} : vector<16x16xf32>, vector<16x8xf32>, vector<16x8xf32> -> vector<16x8xf32>
        %c0_86 = arith.constant 0 : index
        %c0_87 = arith.constant 0 : index
        %115 = vector.load %arg12[%c0_86, %c0_87] : memref<16x16xf32, #tpu.memory_space<vmem>>, vector<16x16xf32>
        %cst_88 = arith.constant dense<0.000000e+00> : vector<16x8xf32>
        %116 = tpu.matmul %115, %112, %cst_88 {dimension_numbers = #tpu.dot_dimension_numbers<[1], [0], [0], [1], [0, 0, 1, 1], [], []>} : vector<16x16xf32>, vector<16x8xf32>, vector<16x8xf32> -> vector<16x8xf32>
        %c0_89 = arith.constant 0 : index
        %c0_90 = arith.constant 0 : index
        %117 = vector.load %arg13[%c0_89, %c0_90] : memref<16x16xf32, #tpu.memory_space<vmem>>, vector<16x16xf32>
        %cst_91 = arith.constant dense<0.000000e+00> : vector<16x8xf32>
        %118 = tpu.matmul %117, %112, %cst_91 {dimension_numbers = #tpu.dot_dimension_numbers<[1], [0], [0], [1], [0, 0, 1, 1], [], []>} : vector<16x16xf32>, vector<16x8xf32>, vector<16x8xf32> -> vector<16x8xf32>
        %cst_92 = arith.constant dense<0.000000e+00> : vector<8x8xf32>
        %119 = tpu.matmul %114, %116, %cst_92 {dimension_numbers = #tpu.dot_dimension_numbers<[0], [0], [1], [1], [0, 1, 1, 1], [], []>} : vector<16x8xf32>, vector<16x8xf32>, vector<8x8xf32> -> vector<8x8xf32>
        %cst_93 = arith.constant 2.500000e-01 : f32
        %120 = vector.broadcast %cst_93 : f32 to vector<8x8xf32>
        %121 = arith.mulf %119, %120 : vector<8x8xf32>
        %cst_94 = arith.constant dense<0xFF800000> : vector<8xf32>
        %122 = vector.multi_reduction <maximumf>, %121, %cst_94 [1] : vector<8x8xf32> to vector<8xf32>
        %123 = vector.shape_cast %122 : vector<8xf32> to vector<8x1xf32>
        %124 = vector.broadcast %123 : vector<8x1xf32> to vector<8x8xf32>
        %125 = arith.subf %121, %124 : vector<8x8xf32>
        %126 = math.exp %125 : vector<8x8xf32>
        %cst_95 = arith.constant dense<0.000000e+00> : vector<8xf32>
        %127 = vector.multi_reduction <add>, %126, %cst_95 [1] : vector<8x8xf32> to vector<8xf32>
        %128 = vector.shape_cast %127 : vector<8xf32> to vector<8x1xf32>
        %129 = vector.broadcast %128 : vector<8x1xf32> to vector<8x8xf32>
        %130 = arith.divf %126, %129 : vector<8x8xf32>
        %cst_96 = arith.constant dense<0.000000e+00> : vector<8x16xf32>
        %131 = tpu.matmul %130, %118, %cst_96 {dimension_numbers = #tpu.dot_dimension_numbers<[1], [1], [0], [0], [0, 0, 1, 0], [], []>} : vector<8x8xf32>, vector<16x8xf32>, vector<8x16xf32> -> vector<8x16xf32>
        %c1_97 = arith.constant 1 : index
        %c0_98 = arith.constant 0 : index
        %c0_99 = arith.constant 0 : index
        %132 = vector.load %arg14[%c1_97, %c0_98, %c0_99] : memref<2x16x8xf32, #tpu.memory_space<vmem>>, vector<1x16x8xf32>
        %133 = vector.shape_cast %132 : vector<1x16x8xf32> to vector<16x8xf32>
        %cst_100 = arith.constant dense<0.000000e+00> : vector<8x8xf32>
        %134 = tpu.matmul %131, %133, %cst_100 {dimension_numbers = #tpu.dot_dimension_numbers<[1], [0], [0], [1], [0, 0, 1, 1], [], []>} : vector<8x16xf32>, vector<16x8xf32>, vector<8x8xf32> -> vector<8x8xf32>
        %135 = arith.truncf %134 : vector<8x8xf32> to vector<8x8xbf16>
        %c8_101 = arith.constant 8 : index
        %c0_102 = arith.constant 0 : index
        %136 = vector.load %arg20[%c8_101, %c0_102] : memref<16x8xbf16, #tpu.memory_space<vmem>>, vector<8x8xbf16>
        tpu.vector_store %arg20[%c8_101, %c0_102], %135 {strides = array<i32>} : memref<16x8xbf16, #tpu.memory_space<vmem>>, vector<8x8xbf16>,
      } else {
      }
    } else {
    }
    %c1_i32 = arith.constant 1 : i32
    %3 = arith.cmpi eq, %arg1, %c1_i32 : i32
    %4 = arith.extui %3 : i1 to i32
    %c0_i32_1 = arith.constant 0 : i32
    %5 = arith.cmpi ne, %4, %c0_i32_1 : i32
    scf.if %5 {
      %c32_i32 = arith.constant 32 : i32
      %6 = arith.muli %arg2, %c32_i32 : i32
      %7 = tpu.assume_multiple %6, 32 : i32
      %8 = arith.index_cast %7 : i32 to index
      %c0 = arith.constant 0 : index
      %9 = vector.load %arg17[%8, %c0] : memref<128x16xbf16, #tpu.memory_space<vmem>>, vector<32x16xbf16>
      %c0_2 = arith.constant 0 : index
      %c0_3 = arith.constant 0 : index
      %10 = vector.load %arg20[%c0_2, %c0_3] : memref<16x8xbf16, #tpu.memory_space<vmem>>, vector<16x8xbf16>
      %cst = arith.constant dense<0.000000e+00> : vector<32x8xf32>
      %11 = tpu.matmul %9, %10, %cst {dimension_numbers = #tpu.dot_dimension_numbers<[1], [0], [0], [1], [0, 0, 1, 1], [], []>} : vector<32x16xbf16>, vector<16x8xbf16>, vector<32x8xf32> -> vector<32x8xf32>
      %c0_4 = arith.constant 0 : index
      %c0_5 = arith.constant 0 : index
      %12 = vector.load %arg15[%c0_4, %c0_5] : memref<1x8xf32, #tpu.memory_space<vmem>>, vector<1x8xf32>
      %13 = vector.broadcast %12 : vector<1x8xf32> to vector<32x8xf32>
      %14 = arith.addf %11, %13 : vector<32x8xf32>
      %c0_6 = arith.constant 0 : index
      %c0_7 = arith.constant 0 : index
      %c0_8 = arith.constant 0 : index
      %15 = vector.load %arg16[%c0_6, %c0_7, %c0_8] : memref<1x32x8xf32, #tpu.memory_space<vmem>>, vector<1x32x8xf32>
      %16 = vector.shape_cast %15 : vector<1x32x8xf32> to vector<32x8xf32>
      %17 = vector.shape_cast %14 : vector<32x8xf32> to vector<1x32x8xf32>
      tpu.vector_store %arg16[%c0_6, %c0_7, %c0_8], %17 {strides = array<i32>} : memref<1x32x8xf32, #tpu.memory_space<vmem>>, vector<1x32x8xf32>,
    } else {
    }
    return
  }
  func.func @transform_0(%arg0: i32, %arg1: i32, %arg2: i32) -> (i32, i32, i32) {
    %c1_i32 = arith.constant 1 : i32
    %0 = arith.subi %c1_i32, %arg1 : i32
    %1 = arith.muli %arg2, %0 : i32
    %c3_i32 = arith.constant 3 : i32
    %2 = arith.muli %c3_i32, %arg1 : i32
    %3 = arith.addi %1, %2 : i32
    %c0_i32 = arith.constant 0 : i32
    %c0_i32_0 = arith.constant 0 : i32
    return %arg0, %3, %c0_i32 : i32, i32, i32
  }
  func.func @transform_1(%arg0: i32, %arg1: i32, %arg2: i32) -> (i32, i32) {
    %c0_i32 = arith.constant 0 : i32
    %c0_i32_0 = arith.constant 0 : i32
    %c0_i32_1 = arith.constant 0 : i32
    return %c0_i32, %c0_i32_0 : i32, i32
  }
  func.func @transform_2(%arg0: i32, %arg1: i32, %arg2: i32) -> (i32, i32) {
    %c0_i32 = arith.constant 0 : i32
    %c0_i32_0 = arith.constant 0 : i32
    %c0_i32_1 = arith.constant 0 : i32
    return %c0_i32, %c0_i32_0 : i32, i32
  }
  func.func @transform_3(%arg0: i32, %arg1: i32, %arg2: i32) -> (i32, i32) {
    %c0_i32 = arith.constant 0 : i32
    %c0_i32_0 = arith.constant 0 : i32
    %c0_i32_1 = arith.constant 0 : i32
    return %c0_i32, %c0_i32_0 : i32, i32
  }
  func.func @transform_4(%arg0: i32, %arg1: i32, %arg2: i32) -> (i32, i32) {
    %c0_i32 = arith.constant 0 : i32
    %c0_i32_0 = arith.constant 0 : i32
    %c0_i32_1 = arith.constant 0 : i32
    return %c0_i32, %c0_i32_0 : i32, i32
  }
  func.func @transform_5(%arg0: i32, %arg1: i32, %arg2: i32) -> (i32, i32) {
    %c0_i32 = arith.constant 0 : i32
    %c0_i32_0 = arith.constant 0 : i32
    %c0_i32_1 = arith.constant 0 : i32
    return %c0_i32, %c0_i32_0 : i32, i32
  }
  func.func @transform_6(%arg0: i32, %arg1: i32, %arg2: i32) -> (i32, i32) {
    %c0_i32 = arith.constant 0 : i32
    %c0_i32_0 = arith.constant 0 : i32
    %c0_i32_1 = arith.constant 0 : i32
    return %c0_i32, %c0_i32_0 : i32, i32
  }
  func.func @transform_7(%arg0: i32, %arg1: i32, %arg2: i32) -> (i32, i32) {
    %c0_i32 = arith.constant 0 : i32
    %c0_i32_0 = arith.constant 0 : i32
    %c0_i32_1 = arith.constant 0 : i32
    return %c0_i32, %c0_i32_0 : i32, i32
  }
  func.func @transform_8(%arg0: i32, %arg1: i32, %arg2: i32) -> (i32, i32) {
    %c0_i32 = arith.constant 0 : i32
    %c0_i32_0 = arith.constant 0 : i32
    %c0_i32_1 = arith.constant 0 : i32
    return %c0_i32, %c0_i32_0 : i32, i32
  }
  func.func @transform_9(%arg0: i32, %arg1: i32, %arg2: i32) -> (i32, i32) {
    %c0_i32 = arith.constant 0 : i32
    %c0_i32_0 = arith.constant 0 : i32
    %c0_i32_1 = arith.constant 0 : i32
    return %c0_i32, %c0_i32_0 : i32, i32
  }
  func.func @transform_10(%arg0: i32, %arg1: i32, %arg2: i32) -> (i32, i32) {
    %c0_i32 = arith.constant 0 : i32
    %c0_i32_0 = arith.constant 0 : i32
    %c0_i32_1 = arith.constant 0 : i32
    return %c0_i32, %c0_i32_0 : i32, i32
  }
  func.func @transform_11(%arg0: i32, %arg1: i32, %arg2: i32) -> (i32, i32, i32) {
    %c0_i32 = arith.constant 0 : i32
    %c0_i32_0 = arith.constant 0 : i32
    %c0_i32_1 = arith.constant 0 : i32
    %c0_i32_2 = arith.constant 0 : i32
    return %c0_i32, %c0_i32_0, %c0_i32_1 : i32, i32, i32
  }
  func.func @transform_12(%arg0: i32, %arg1: i32, %arg2: i32) -> (i32, i32) {
    %c0_i32 = arith.constant 0 : i32
    %c0_i32_0 = arith.constant 0 : i32
    %c0_i32_1 = arith.constant 0 : i32
    return %c0_i32, %c0_i32_0 : i32, i32
  }
  func.func @transform_13(%arg0: i32, %arg1: i32, %arg2: i32) -> (i32, i32, i32) {
    %0 = arith.muli %arg2, %arg1 : i32
    %c0_i32 = arith.constant 0 : i32
    %c0_i32_0 = arith.constant 0 : i32
    return %arg0, %0, %c0_i32 : i32, i32, i32
  }
}

</mosaic_0001>

<bundles_post_ra>
// kernel: tpu_custom_call.1
= control target key start
LH: loop header
LB: loop body
LE: loop exit
PB: predicated region body
PF: predicated region fallthrough
CT: control target
= control target key end

     0   :  { %s3804_s25 = smov 0   ;;  %s3806_s26 = smov 0   ;;  %s4372_s0 = inlined_call_operand.vmem [shape: bf16[2,128,72], index: 0, kind: input, shape index: {}]   ;;  %s4373_s1 = inlined_call_operand.vmem [shape: bf16[72,32], index: 1, kind: input, shape index: {}]   ;;  %s4374_s2 = inlined_call_operand.vmem [shape: f32[1,32], index: 2, kind: input, shape index: {}]   ;;  %s4375_s3 = inlined_call_operand.vmem [shape: bf16[72,32], index: 3, kind: input, shape index: {}]   ;;  %s4376_s4 = inlined_call_operand.vmem [shape: f32[1,32], index: 4, kind: input, shape index: {}]   ;;  %s4377_s5 = inlined_call_operand.vmem [shape: bf16[32,16], index: 5, kind: input, shape index: {}]   ;;  %s4378_s6 = inlined_call_operand.vmem [shape: f32[1,16], index: 6, kind: input, shape index: {}]   ;;  %s4379_s7 = inlined_call_operand.vmem [shape: f32[16,2], index: 7, kind: input, shape index: {}]   ;;  %s4380_s8 = inlined_call_operand.vmem [shape: f32[16,16], index: 8, kind: input, shape index: {}]   ;;  %s4381_s9 = inlined_call_operand.vmem [shape: f32[16,16], index: 9, kind: input, shape index: {}]   ;;  %s4382_s10 = inlined_call_operand.vmem [shape: f32[16,16], index: 10, kind: input, shape index: {}]   ;;  %s4383_s11 = inlined_call_operand.vmem [shape: f32[2,16,8], index: 11, kind: input, shape index: {}]   ;;  %s4384_s12 = inlined_call_operand.vmem [shape: f32[1,8], index: 12, kind: input, shape index: {}]   ;;  %s4385_s13 = inlined_call_operand.vmem [shape: f32[2,128,8], index: 13, kind: output, shape index: {}]  }
   0x1   :  { %4391 = sst [smem:[#allocation13_spill]] %s4383_s11  ;;  %s3808_s27 = smov 0  }
   0x2   :  { %4392 = sst [smem:[#allocation14_spill]] %s4384_s12  ;;  %s3810_s28 = smov 0  }
   0x3   :  { %s3812_s29 = smov 0   ;;  %s3814_s30 = smov 0  }
   0x4   :  { %s3816_s14 = smov 0  }
   0x5 LB: > { %4393 = sst [smem:[#allocation6_spill]] %s3710_s28  ;;  %s35_s15 = sadd.s32 1, %s3710_s28  ;;  %s3722_s14 = sphi %s3816_s14, %s23_s14   ;;  %s3718_s30 = sphi %s3814_s30, %s4409_s30   ;;  %s3714_s29 = sphi %s3812_s29, %s4408_s29   ;;  %s3710_s28 = sphi %s3810_s28, %s4407_s28   ;;  %s3706_s27 = sphi %s3808_s27, %s4406_s27   ;;  %s3702_s26 = sphi %s3806_s26, %s4405_s26   ;;  %s3698_s25 = sphi %s3804_s25, %s4404_s25  }
   0x6   : > { %4394 = sst [smem:[#allocation7_spill]] %s3714_s29  ;;  %p36_p0 = scmp.ge.s32.totalorder %s35_s15, 4 }
   0x7   : > { %4395 = sst [smem:[#allocation8_spill]] %s3718_s30  ;;  %s38_s16 = sadd.s32 1, %s3714_s29 }
   0x8   : > { %4396 = sst [smem:[#allocation9_spill]] %s3722_s14  ;;  %p3199_p1 = scmp.ge.s32.totalorder %s3722_s14, 1 }
   0x9   : > { %p433_p2 = scmp.lt.s32.totalorder %s3722_s14, 17  ;;  %s4411_s15 = smov (%p36_p0, %s35_s15), 0 }
   0xa   : > { %4397 = sst [smem:[#allocation10_spill]] %s4411_s15  ;;  %s4413_s16 = smov (!%p36_p0, %s38_s16), %s3714_s29 }
   0xb   : > { %p434_p3 = pnand %p3199_p1, %p433_p2  ;;  %p40_p4 = scmp.ge.s32.totalorder %s4413_s16, 2 }
   0xc   : > { %s42_s17 = sadd.s32 1, %s3718_s30  ;;  %s490_s18 = ssub.s32 (!%p434_p3), 1, %s3702_s26 }
   0xd   : > { %s4415_s16 = smov (%p40_p4, %s4413_s16), 0  ;;  %s4417_s17 = smov (!%p40_p4, %s42_s17), %s3718_s30 }
   0xe   : > { %4398 = sst [smem:[#allocation11_spill]] %s4415_s16  ;;  %p44_p5 = scmp.ge.s32.totalorder %s4417_s17, 2 }
   0xf   : > { %437 = sbr.rel (%p434_p3) target bundleno = 4221 (0x107d), region = 72  ;;  %p495_p6 = scmp.lt.s32.totalorder (!%p434_p3), %s3706_s27, 1 }
  0x10   : > { %s4419_s17 = smov (%p44_p5, %s4417_s17), 0  ;;  %s492_s19 = smul.u32 (!%p434_p3), 3, %s3702_s26 }
  0x11   : > { %4399 = sst [smem:[#allocation12_spill]] %s4419_s17  ;;  %s491_s20 = smul.u32 (!%p434_p3), %s3698_s25, %s490_s18 }
  0x12   : > { %s508_s21 = smul.u32 (!%p434_p3), %s3698_s25, %s3702_s26  ;;  %p3206_p9 = scmp.ne.s32.totalorder (!%p434_p3), %s3702_s26, 0 }
  0x13   : > { %s493_s22 = sadd.s32 (!%p434_p3), %s492_s19, %s491_s20 }
  0x14   : > { %s3200_s23 = sshll.u32 %s493_s22, 2  ;;  %s3203_s24 = sshll.u32 %s508_s21, 2 }
  0x15   : > { %s4421_s27 = smov (!%p495_p6, %s3706_s27), 1  ;;  %p497_p7 = scmp.lt.s32.totalorder %s3200_s23, 15 }
  0x16   : > { %p512_p8 = scmp.lt.s32.totalorder %s3203_s24, 15  ;;  %s3201_s16 = sshll.u32 %s4421_s27, 4 }
  0x17   : > { %s4423_s23 = smov (!%p497_p7, %s3200_s23), 15  ;;  %524 = sbr.rel (%p3206_p9) target bundleno = 4007 (0xfa7), region = 76 }
  0x18   : > { %s4425_s24 = smov (!%p512_p8, %s3203_s24), 15  ;;  %s500_s17 = sadd.s32 %s3201_s16, %s4423_s23 }
  0x19   : > { %s3202_s15 = sshll.u32 %s500_s17, 2  ;;  %s515_s30 = sadd.s32 %s3201_s16, %s4425_s24 }
  0x1a   : > { %s3858_s14 = scalar_lea.vmem %s4372_s0, %s3202_s15  ;;  %s3205_s18 = sshll.u32 %s515_s30, 3 }
  0x1b   : > { %s3863_s19 = scalar_lea.vmem %s4385_s13, %s3205_s18  ;;  %p3207_p10 = scmp.ne.s32.totalorder (!%p3206_p9), %s3698_s25, 0 }
  0x1d   : > { %528 = sbr.rel (%p3207_p10) target bundleno = 38 (0x26), region = 80 }
  0x22   : > { %vm529_vm0 = vcmask 64512   ;;  %vm534_vm1 = vcmask 122880   ;;  %v3724_v0 = vmov 0.0  }
  0x23   : > { %530 = vst.msk [vmem:[#allocation3] sm:$0xff] %vm529_vm0, %v3724_v0  ;;  %531 = vst.msk [vmem:[#allocation3 + $0x8] sm:$0xff] %vm529_vm0, %v3724_v0 }
  0x24   : > { %532 = vst.msk [vmem:[#allocation3 + $0x10] sm:$0xff] %vm529_vm0, %v3724_v0  ;;  %533 = vst.msk [vmem:[#allocation3 + $0x18] sm:$0xff] %vm529_vm0, %v3724_v0 }
  0x25   : > { %535 = vst.msk [vmem:[#allocation4] sm:$0x1] %vm534_vm1, %v3724_v0 }
  0x26 PF: > { %vm600_vm2 = vcmask 1043456   ;;  %v3623_v1 = vld [vmem:[%s4375_s3 + $0x20] ss:$0 sps:$4 sm:$0xff]   ;;  %v3624_v2 = vld [vmem:[%s4375_s3 + $0x18] sm:$0xff]   ;;  %v3625_v4 = vld [vmem:[%s4375_s3 + $0x10] sm:$0xff]   ;;  %vm593_vm3 = vcmask 588800   ;;  %v849_v47 = vlaneseq }
  0x27   : > { %3555 = vmatprep.subr.msk.bf16.mxu1 %vm600_vm2, %v3623_v1  ;;  %v697_v3 = vsel %vm600_vm2, %v3623_v1, 0  ;;  %v3628_v5 = vld [vmem:[%s3858_s14] sm:$0xff]   ;;  %v3626_v6 = vld [vmem:[%s4375_s3 + $0x8] sm:$0xff]   ;;  %v3631_v8 = vld [vmem:[%s4373_s1 + $0x18] sm:$0xff]   ;;  %vm773_vm4 = vcmask 261120   ;;  %s3725_s18 = smov 120  }
  0x28   : > { %3397 = vmatpush3.bf16.msra.mxu1 %v697_v3  ;;  %3406 = vmatprep.mubr.msk.bf16.mxu1 %vm593_vm3, %v3628_v5  ;;  %v3630_v7 = vld [vmem:[%s4373_s1 + $0x20] ss:$0 sps:$4 sm:$0xff]   ;;  %v3632_v10 = vld [vmem:[%s4373_s1 + $0x10] sm:$0xff]   ;;  %v3633_v12 = vld [vmem:[%s4373_s1 + $0x8] sm:$0xff]   ;;  %v3726_v45 = vmov 1983009808  }
  0x29   : > { %3398 = vmatprep.subr.bf16.mxu1 %v3624_v2  ;;  %3392 = vmatprep.mubr.msk.bf16.mxu0 %vm593_vm3, %v3628_v5  ;;  %v602_v9 = vsel %vm600_vm2, %v3630_v7, 0  ;;  %v3627_v11 = vld [vmem:[%s4375_s3] sm:$0xff]   ;;  %v3629_v13 = vld [vmem:[%s3858_s14 + $0x8] sm:$0xff]   ;;  %v847_v46 = vunpack.c.l.s4 %v3726_v45  ;;  %v3951_v49 = vshrl.u32 %v849_v47, 7  ;;  %v3727_v50 = vmov 1934713408  }
  0x2a   : > { %3554 = vmatprep.subr.msk.bf16.mxu0 %vm600_vm2, %v3630_v7  ;;  %v3634_v14 = vld [vmem:[%s4373_s1] sm:$0xff]   ;;  %v3635_v15 = vld [vmem:[%s4377_s5 + $0x8] sm:$0xff]   ;;  %v878_v51 = vunpack.c.l.s4 %v3727_v50  ;;  %vm1109_vm5 = vcmask 58368   ;;  %v3728_v3 = vmov 0.0   ;;  %vm1405_vm6 = vcmask 15360   ;;  %s3729_s29 = smov 112  }
  0x2b   : > { %3383 = vmatpush3.bf16.msra.mxu0 %v602_v9  ;;  %v3636_v16 = vld [vmem:[%s4377_s5] sm:$0xff]   ;;  %v848_v48 = vunpack.c.0.s8 %v847_v46  ;;  %vm1370_vm7 = vcmask 1041409   ;;  %vm1372_vm8 = vcmask 1042434   ;;  %vm1374_vm9 = vcmask 1043459   ;;  %s3247_s30 = sshll.u32 %s3698_s25, 5  ;;  %p3255_p11 = scmp.ne.s32.totalorder %s3698_s25, 3 }
  0x2c   : > { %3399 = vmatpush3.bf16.msra.mxu1 %v3624_v2  ;;  %3384 = vmatprep.subr.bf16.mxu0 %v3631_v8  ;;  %v3218_v20 = vld [vmem:[%s4376_s4] ss:$0 sm:$0xff]  ;;  %v879_v53 = vunpack.c.0.s8 %v878_v51  ;;  %vm1376_vm10 = vcmask 1044484   ;;  %vm1378_vm11 = vcmask 1045509   ;;  %vm1382_vm12 = vcmask 1047559   ;;  %s1756_s15 = sshra.s32 %s3247_s30, 3 }
  0x2d   : > { %3400 = vmatprep.subr.bf16.mxu1 %v3625_v4  ;;  %v3919_v26 = vld [vmem:[%s4374_s2] ss:$0 sm:$0xff]  ;;  %v3954_v52 = vsub.s32 %v848_v48, %v3951_v49  ;;  %vm1380_vm13 = vcmask 1046534   ;;  %vm1517_vm14 = vcmask 130048   ;;  %s3252_s14 = sshll.u32 %s1756_s15, 2  ;;  %vm1760_vm15 = vcmask 125952  }
  0x2e   : > { %v3226_v36 = vld [vmem:[%s4378_s6] ss:$0 sm:$0xff]  ;;  %v3960_v57 = vsub.s32 %v879_v53, %v3951_v49  ;;  %s1759_s16 = scalar_lea.vmem [#allocation2], %s3252_s14  ;;  %vm3730_vm0 = vmmov 0   ;;  %vm1735_vm1 = vcmask 122880   ;;  %vm1829_vm2 = vcmask 64512  }
  0x2f   : > { %3385 = vmatpush3.bf16.msra.mxu0 %v3631_v8  ;;  %s4400_s14 = sld [smem:[#allocation13_spill]] (!%p3255_p11)  ;;  %s3733_s21 = smov (!%p3255_p11), 120  }
  0x30   : > { %3401 = vmatpush3.bf16.msra.mxu1 %v3625_v4  ;;  %3386 = vmatprep.subr.bf16.mxu0 %v3632_v10 }
  0x31   : > { %3402 = vmatprep.subr.bf16.mxu1 %v3626_v6 }
  0x33   : > { %3387 = vmatpush3.bf16.msra.mxu0 %v3632_v10 }
  0x34   : > { %3403 = vmatpush3.bf16.msra.mxu1 %v3626_v6  ;;  %3388 = vmatprep.subr.bf16.mxu0 %v3633_v12 }
  0x35   : > { %3404 = vmatprep.subr.bf16.mxu1 %v3627_v11 }
  0x37   : > { %3389 = vmatpush3.bf16.msra.mxu0 %v3633_v12 }
  0x38   : > { %3405 = vmatpush3.bf16.msra.mxu1 %v3627_v11  ;;  %3390 = vmatprep.subr.bf16.mxu0 %v3634_v14 }
  0x3b   : > { %3407 = vmatmul.mubr.msk.bf16.vlgmr.msra.gmra.mxu1 %vm593_vm3, %v3629_v13  ;;  %3391 = vmatpush3.bf16.msra.mxu0 %v3634_v14 }
  0x3c   : > { %3410 = vmatprep.subr.bf16.mxu0 %v3635_v15 }
  0x3e   : > { %3393 = vmatmul.mubr.msk.bf16.vlgmr.msra.gmra.mxu0 %vm593_vm3, %v3629_v13 }
  0x3f   : > { %3411 = vmatpush3.bf16.msra.mxu0 %v3635_v15 }
  0x40   : > { %3412 = vmatprep.subr.bf16.mxu0 %v3636_v16 }
  0x43   : > { %3413 = vmatpush3.bf16.msra.mxu0 %v3636_v16 }
  0xfb   : > { %v3408_v17 = vpop.f32.mrf.mxu1 }
  0xfc   : > { %v742_v27 = vadd.f32 %v3408_v17, %v3218_v20 }
  0xfd   : > { %v733_v18 = vpop.f32.mrf.mxu1 }
  0xfe   : > { %v734_v23 = vadd.f32 %v3218_v20, %v733_v18  ;;  %v3394_v25 = vpop.f32.mrf.mxu0 }
  0xff   : > { %v3409_v19 = vpop.f32.mrf.mxu1  ;;  %v647_v31 = vadd.f32 %v3394_v25, %v3919_v26 }
 0x100   : > { %v745_v21 = vadd.f32 %v3409_v19, %v3218_v20  ;;  %v3921_v29 = vpop.f32.mrf.mxu0 }
 0x101   : > { %v736_v22 = vpop.f32.mrf.mxu1 }
 0x102   : > { %v737_v24 = vadd.f32 %v3218_v20, %v736_v22  ;;  %v749_v30 = vpack.c.bf16 %v745_v21, %v742_v27  ;;  %v3395_v32 = vpop.f32.mrf.mxu0 }
 0x103   : > { %v650_v33 = vadd.f32 %v3395_v32, %v3919_v26 }
 0x104   : > { %v748_v28 = vpack.c.bf16 %v737_v24, %v734_v23  ;;  %v3929_v35 = vpop.f32.mrf.mxu0 }
 0x105   : > { %v3927_v34 = vpack.c.bf16 %v650_v33, %v647_v31 }
 0x106   : > { %3414 = vmatprep.mubr.msk.bf16.mxu0 %vm773_vm4, %v748_v28 }
 0x107   : > { %3415 = vmatmul.mubr.msk.bf16.vlgmr.msra.gmra.mxu0 %vm773_vm4, %v749_v30 }
 0x1c7   : > { %v3416_v37 = vpop.f32.mrf.mxu0 }
 0x1c8   : > { %v3934_v38 = vadd.f32 %v3416_v37, %v3226_v36 }
 0x1c9   : > { %v814_v39 = vpop.f32.mrf.mxu0 }
 0x1ca   : > { %v3936_v40 = vadd.f32 %v3226_v36, %v814_v39  ;;  %837 = vrot.lane.b32.xlu1 %v3934_v38, %s3725_s18  ;;  %v984_v55 = vrot.slane %v3934_v38, %v3954_v52  ;;  %v977_v8 = vcombine.high %v3934_v38, %v3728_v3 }
 0x1cb   : > { %v3417_v41 = vpop.f32.mrf.mxu0 }
 0x1cc   : > { %v3940_v42 = vadd.f32 %v3417_v41, %v3226_v36  ;;  %833 = vrot.lane.b32.xlu0 %v3936_v40, %s3725_s18  ;;  %v852_v61 = vrot.slane %v3936_v40, %v3954_v52  ;;  %v845_v13 = vcombine.high %v3936_v40, %v3728_v3  ;;  %v991_v20 = vrot.slane %v977_v8, %v3954_v52 }
 0x1cd   : > { %v817_v43 = vpop.f32.mrf.mxu0 }
 0x1ce   : > { %v3944_v44 = vadd.f32 %v3226_v36, %v817_v43  ;;  %839 = vrot.lane.b32.xlu1 %v3940_v42, %s3725_s18  ;;  %v1050_v17 = vrot.slane %v3940_v42, %v3954_v52  ;;  %v859_v25 = vrot.slane %v845_v13, %v3954_v52 }
 0x1d0   : > { %835 = vrot.lane.b32.xlu0 %v3944_v44, %s3725_s18  ;;  %v918_v27 = vrot.slane %v3944_v44, %v3954_v52 }
 0x23c   : > { %v838_v54 = vpop.permute.xlu1 %837 }
 0x23d   : > { %v999_v56 = vrot.slane %v838_v54, %v3954_v52  ;;  %v992_v4 = vcombine.high %v838_v54, %v3728_v3 }
 0x23e   : > { %v834_v58 = vpop.permute.xlu0 %833 }
 0x23f   : > { %v1007_v59 = vcombine.low %v984_v55, %v999_v56  ;;  %v1008_v60 = vcombine.high %v984_v55, %v999_v56  ;;  %v867_v62 = vrot.slane %v834_v58, %v3954_v52  ;;  %v860_v7 = vcombine.high %v834_v58, %v3728_v3 }
 0x240   : > { %v840_v2 = vpop.permute.xlu1 %839  ;;  %v1006_v15 = vrot.slane %v992_v4, %v3954_v52  ;;  %v1043_v55 = vcombine.high %v3940_v42, %v3728_v3 }
 0x241   : > { %v1015_v63 = vrot.slane %v1007_v59, %v3960_v57  ;;  %v875_v0 = vcombine.low %v852_v61, %v867_v62  ;;  %v1022_v1 = vrot.slane %v1008_v60, %v3960_v57  ;;  %v1065_v9 = vrot.slane %v840_v2, %v3954_v52 }
 0x242   : > { %v836_v14 = vpop.permute.xlu0 %835  ;;  %v876_v16 = vcombine.high %v852_v61, %v867_v62  ;;  %v874_v19 = vrot.slane %v860_v7, %v3954_v52  ;;  %v1023_v31 = vcombine.low %v991_v20, %v1006_v15  ;;  %v1024_v43 = vcombine.high %v991_v20, %v1006_v15 }
 0x243   : > { %v1158_v5 = vsel %vm1109_vm5, %v1015_v63, -inf  ;;  %v1039_v6 = vcombine.high %v1015_v63, %v3728_v3  ;;  %v1040_v11 = vcombine.high %v1022_v1, %v3728_v3  ;;  %v883_v12 = vrot.slane %v875_v0, %v3960_v57 }
 0x244   : > { %1159 = vmax.xlane.f32.xlu0 %v1158_v5  ;;  %v1164_v18 = vsel %vm1109_vm5, %v1022_v1, -inf  ;;  %v1073_v21 = vcombine.low %v1050_v17, %v1065_v9  ;;  %v933_v22 = vrot.slane %v836_v14, %v3954_v52  ;;  %v890_v30 = vrot.slane %v876_v16, %v3960_v57 }
 0x245   : > { %v1161_v10 = vsel %vm1109_vm5, %v1039_v6, -inf  ;;  %v1167_v23 = vsel %vm1109_vm5, %v1040_v11, -inf  ;;  %v907_v24 = vcombine.high %v883_v12, %v3728_v3  ;;  %v1110_v28 = vsel %vm1109_vm5, %v883_v12, -inf }
 0x246   : > { %1162 = vmax.xlane.f32.xlu1 %v1161_v10  ;;  %v892_v32 = vcombine.high %v859_v25, %v874_v19  ;;  %v942_v33 = vcombine.high %v918_v27, %v933_v22  ;;  %v3995_v37 = vrot.slane %v1073_v21, %v3960_v57  ;;  %v1116_v39 = vsel %vm1109_vm5, %v890_v30, -inf }
 0x247   : > { %v1113_v36 = vsel %vm1109_vm5, %v907_v24, -inf  ;;  %v1031_v41 = vrot.slane %v1023_v31, %v3960_v57  ;;  %v1058_v45 = vcombine.high %v840_v2, %v3728_v3  ;;  %v1074_v46 = vcombine.high %v1050_v17, %v1065_v9 }
 0x248   : > { %1165 = vmax.xlane.f32.xlu0 %v1164_v18  ;;  %v1182_v48 = vsel %vm1109_vm5, %v3995_v37, -inf  ;;  %v956_v50 = vrot.slane %v942_v33, %v3960_v57  ;;  %v906_v51 = vrot.slane %v892_v32, %v3960_v57  ;;  %v4006_v54 = vrot.slane %v1024_v43, %v3960_v57 }
 0x249   : > { %v1170_v53 = vsel %vm1109_vm5, %v1031_v41, -inf  ;;  %v4011_v56 = vrot.slane %v1058_v45, %v3954_v52  ;;  %v1088_v60 = vrot.slane %v1074_v46, %v3960_v57  ;;  %v908_v62 = vcombine.high %v890_v30, %v3728_v3 }
 0x24a   : > { %1168 = vmax.xlane.f32.xlu1 %v1167_v23  ;;  %v1140_v58 = vsel %vm1109_vm5, %v956_v50, -inf  ;;  %v910_v59 = vcombine.high %v906_v51, %v3728_v3  ;;  %v1176_v61 = vsel %vm1109_vm5, %v4006_v54, -inf  ;;  %v891_v63 = vcombine.low %v859_v25, %v874_v19 }
 0x24b   : > { %v1057_v0 = vrot.slane %v1043_v55, %v3954_v52  ;;  %v941_v1 = vcombine.low %v918_v27, %v933_v22  ;;  %v1106_v4 = vcombine.high %v1088_v60, %v3728_v3  ;;  %v1119_v6 = vsel %vm1109_vm5, %v908_v62, -inf }
 0x24c   : > { %1111 = vmax.xlane.f32.xlu0 %v1110_v28  ;;  %v1131_v2 = vsel %vm1109_vm5, %v910_v59, -inf  ;;  %v899_v7 = vrot.slane %v891_v63, %v3960_v57  ;;  %v926_v8 = vcombine.high %v836_v14, %v3728_v3  ;;  %v911_v12 = vcombine.high %v3944_v44, %v3728_v3 }
 0x24d   : > { %v1089_v5 = vcombine.low %v1057_v0, %v4011_v56  ;;  %v1191_v9 = vsel %vm1109_vm5, %v1106_v4, -inf  ;;  %v949_v11 = vrot.slane %v941_v1, %v3960_v57  ;;  %v1128_v18 = vsel %vm1109_vm5, %v906_v51, -inf }
 0x24e   : > { %1114 = vmax.xlane.f32.xlu1 %v1113_v36  ;;  %v1122_v13 = vsel %vm1109_vm5, %v899_v7, -inf  ;;  %v940_v15 = vrot.slane %v926_v8, %v3954_v52  ;;  %v925_v14 = vrot.slane %v911_v12, %v3954_v52  ;;  %v974_v20 = vcombine.high %v956_v50, %v3728_v3 }
 0x24f   : > { %v1097_v10 = vrot.slane %v1089_v5, %v3960_v57  ;;  %v973_v17 = vcombine.high %v949_v11, %v3728_v3  ;;  %v1188_v22 = vsel %vm1109_vm5, %v1088_v60, -inf  ;;  %v1041_v23 = vcombine.high %v1031_v41, %v3728_v3 }
 0x250   : > { %1117 = vmax.xlane.f32.xlu0 %v1116_v39  ;;  %v957_v21 = vcombine.low %v925_v14, %v940_v15  ;;  %v1143_v24 = vsel %vm1109_vm5, %v974_v20, -inf  ;;  %v958_v27 = vcombine.high %v925_v14, %v940_v15  ;;  %v1134_v31 = vsel %vm1109_vm5, %v949_v11, -inf }
 0x251   : > { %v1194_v16 = vsel %vm1109_vm5, %v1097_v10, -inf  ;;  %v1137_v19 = vsel %vm1109_vm5, %v973_v17, -inf  ;;  %v1173_v52 = vsel %vm1109_vm5, %v1041_v23, -inf  ;;  %v1107_v30 = vcombine.high %v1097_v10, %v3728_v3 }
 0x252   : > { %1183 = vmax.xlane.f32.xlu1 %v1182_v48  ;;  %v965_v25 = vrot.slane %v957_v21, %v3960_v57  ;;  %v909_v32 = vcombine.high %v899_v7, %v3728_v3  ;;  %v972_v39 = vrot.slane %v958_v27, %v3960_v57  ;;  %v1105_v43 = vcombine.high %v3995_v37, %v3728_v3 }
 0x253   : > { %v1197_v33 = vsel %vm1109_vm5, %v1107_v30, -inf  ;;  %v1090_v48 = vcombine.high %v1057_v0, %v4011_v56  ;;  %v1042_v37 = vcombine.high %v4006_v54, %v3728_v3  ;;  %v4080_v54 = vld [vmem:[%s4379_s7] sm:$0xff]  ;;  %v642_v62 = vadd.f32 %v3919_v26, %v3929_v35 }
 0x254   : > { %1171 = vmax.xlane.f32.xlu0 %v1170_v53  ;;  %v1146_v28 = vsel %vm1109_vm5, %v965_v25, -inf  ;;  %v975_v36 = vcombine.high %v965_v25, %v3728_v3  ;;  %v1125_v41 = vsel %vm1109_vm5, %v909_v32, -inf  ;;  %v976_v46 = vcombine.high %v972_v39, %v3728_v3 }
 0x255   : > { %v1185_v50 = vsel %vm1109_vm5, %v1105_v43, -inf  ;;  %v1104_v53 = vrot.slane %v1090_v48, %v3960_v57  ;;  %v1152_v55 = vsel %vm1109_vm5, %v972_v39, -inf  ;;  %v1179_v56 = vsel %vm1109_vm5, %v1042_v37, -inf  ;;  %v4070_v57 = vld [vmem:[%s4379_s7 + $0x8] sm:$0xff] }
 0x256   : > { %1141 = vmax.xlane.f32.xlu1 %v1140_v58  ;;  %v1149_v45 = vsel %vm1109_vm5, %v975_v36, -inf  ;;  %v1155_v51 = vsel %vm1109_vm5, %v976_v46, -inf  ;;  %3418 = vmatprep.subr.msk.mxu1 %vm1405_vm6, %v4070_v57 }
 0x257   : > { %v1200_v58 = vsel %vm1109_vm5, %v1104_v53, -inf  ;;  %v1108_v59 = vcombine.high %v1104_v53, %v3728_v3  ;;  %3428 = vmatprep.subr.mxu0 %v4070_v57  ;;  %3419 = vmatpush3.xpose.msk.msra.mxu1 %vm1405_vm6, %v4070_v57 }
 0x258   : > { %1177 = vmax.xlane.f32.xlu0 %v1176_v61  ;;  %3429 = vmatpush3.msra.mxu0 %v4070_v57  ;;  %v639_v61 = vadd.f32 %v3919_v26, %v3921_v29 }
 0x259   : > { %v1203_v60 = vsel %vm1109_vm5, %v1108_v59, -inf  ;;  %3420 = vmatprep.subr.msk.mxu1 %vm1405_vm6, %v4080_v54  ;;  %3430 = vmatprep.subr.mxu0 %v4080_v54 }
 0x25a   : > { %1132 = vmax.xlane.f32.xlu1 %v1131_v2  ;;  %3431 = vmatpush3.msra.mxu0 %v4080_v54  ;;  %v1739_v63 = vpack.c.bf16 %v642_v62, %v639_v61 }
 0x25b   : > { %3448 = vmatprep.subr.bf16.mxu0 %v3728_v3  ;;  %3421 = vmatpush3.xpose.msk.msra.mxu1 %vm1405_vm6, %v4080_v54 }
 0x25c   : > { %1120 = vmax.xlane.f32.xlu0 %v1119_v6  ;;  %3438 = vmatprep.subr.msk.mxu1 %vm1405_vm6, %v4070_v57 }
 0x25e   : > { %1192 = vmax.xlane.f32.xlu1 %v1191_v9 }
 0x260   : > { %1123 = vmax.xlane.f32.xlu0 %v1122_v13 }
 0x262   : > { %1195 = vmax.xlane.f32.xlu1 %v1194_v16  ;;  %v1241_v16 = vand.u32 127, %v849_v47 }
 0x264   : > { %1129 = vmax.xlane.f32.xlu0 %v1128_v18  ;;  %v4112_v18 = vsub.s32 %v1241_v16, %v3951_v49 }
 0x266   : > { %1138 = vmax.xlane.f32.xlu1 %v1137_v19 }
 0x268   : > { %1189 = vmax.xlane.f32.xlu0 %v1188_v22 }
 0x26a   : > { %1144 = vmax.xlane.f32.xlu1 %v1143_v24 }
 0x26c   : > { %1174 = vmax.xlane.f32.xlu0 %v1173_v52 }
 0x26e   : > { %1147 = vmax.xlane.f32.xlu1 %v1146_v28 }
 0x270   : > { %1135 = vmax.xlane.f32.xlu0 %v1134_v31 }
 0x272   : > { %1198 = vmax.xlane.f32.xlu1 %v1197_v33 }
 0x274   : > { %1126 = vmax.xlane.f32.xlu0 %v1125_v41 }
 0x276   : > { %1150 = vmax.xlane.f32.xlu1 %v1149_v45 }
 0x278   : > { %1186 = vmax.xlane.f32.xlu0 %v1185_v50 }
 0x27a   : > { %1156 = vmax.xlane.f32.xlu1 %v1155_v51 }
 0x27c   : > { %1153 = vmax.xlane.f32.xlu0 %v1152_v55 }
 0x27e   : > { %1201 = vmax.xlane.f32.xlu1 %v1200_v58 }
 0x280   : > { %1180 = vmax.xlane.f32.xlu0 %v1179_v56 }
 0x284   : > { %1204 = vmax.xlane.f32.xlu0 %v1203_v60 }
 0x28f   : > { %1837 = vrot.lane.b32.xlu1 %v1739_v63, %s3729_s29 }
 0x29a   : > { %1839 = vrot.lane.b32.xlu0 %v3927_v34, %s3729_s29 }
 0x2b8   : > { %1767 = vxpose.xlu0.c.b16.start [1/2] (short) (narrow) %v1739_v63, 16 }
 0x2bc   : > { %1768 = vxpose.xlu0.c.b16.end [2/2] (short) (narrow) %v3927_v34, 16 }
 0x2cd   : > { %v1160_v26 = vpop.xlane.xlu0 %1159 }
 0x2ce   : > { %v1309_v32 = vrot.slane %v1160_v26, %v4112_v18 }
 0x2cf   : > { %v1163_v29 = vpop.xlane.xlu1 %1162 }
 0x2d0   : > { %v1313_v25 = vrot.slane %v1163_v29, %v4112_v18 }
 0x2d1   : > { %v1166_v35 = vpop.xlane.xlu0 %1165 }
 0x2d2   : > { %v1317_v33 = vrot.slane %v1166_v35, %v4112_v18  ;;  %v1391_v43 = vsel %vm1370_vm7, %v1313_v25, %v1309_v32 }
 0x2d3   : > { %v4098_v0 = vpop.xlane.xlu1 %1168 }
 0x2d4   : > { %v1392_v56 = vsel %vm1372_vm8, %v1317_v33, %v1391_v43  ;;  %v1321_v62 = vrot.slane %v4098_v0, %v4112_v18 }
 0x2d5   : > { %v1112_v1 = vpop.xlane.xlu0 %1111 }
 0x2d6   : > { %v1245_v22 = vrot.slane %v1112_v1, %v4112_v18 }
 0x2d7   : > { %v1115_v2 = vpop.xlane.xlu1 %1114 }
 0x2d8   : > { %v1249_v20 = vrot.slane %v1115_v2, %v4112_v18 }
 0x2d9   : > { %v1118_v4 = vpop.xlane.xlu0 %1117 }
 0x2da   : > { %v1253_v23 = vrot.slane %v1118_v4, %v4112_v18  ;;  %v1371_v47 = vsel %vm1370_vm7, %v1249_v20, %v1245_v22 }
 0x2db   : > { %v4100_v5 = vpop.xlane.xlu1 %1183 }
 0x2dc   : > { %v1373_v36 = vsel %vm1372_vm8, %v1253_v23, %v1371_v47  ;;  %v1341_v63 = vrot.slane %v4100_v5, %v4112_v18 }
 0x2dd   : > { %v4102_v6 = vpop.xlane.xlu0 %1171 }
 0x2de   : > { %v1325_v35 = vrot.slane %v4102_v6, %v4112_v18 }
 0x2df   : > { %v1142_v7 = vpop.xlane.xlu1 %1141 }
 0x2e0   : > { %v1285_v45 = vrot.slane %v1142_v7, %v4112_v18 }
 0x2e1   : > { %v4104_v8 = vpop.xlane.xlu0 %1177 }
 0x2e3   : > { %v1133_v9 = vpop.xlane.xlu1 %1132 }
 0x2e4   : > { %v1273_v55 = vrot.slane %v1133_v9, %v4112_v18 }
 0x2e5   : > { %v1121_v10 = vpop.xlane.xlu0 %1120 }
 0x2e6   : > { %v1257_v52 = vrot.slane %v1121_v10, %v4112_v18 }
 0x2e7   : > { %v4106_v11 = vpop.xlane.xlu1 %1192 }
 0x2e8   : > { %v1375_v46 = vsel %vm1374_vm9, %v1257_v52, %v1373_v36  ;;  %v1353_v0 = vrot.slane %v4106_v11, %v4112_v18 }
 0x2e9   : > { %v1124_v34 = vpop.xlane.xlu0 %1123 }
 0x2ea   : > { %v1261_v28 = vrot.slane %v1124_v34, %v4112_v18 }
 0x2eb   : > { %v4108_v12 = vpop.xlane.xlu1 %1195 }
 0x2ec   : > { %v1377_v50 = vsel %vm1376_vm10, %v1261_v28, %v1375_v46 }
 0x2ed   : > { %v1130_v13 = vpop.xlane.xlu0 %1129 }
 0x2ee   : > { %v1269_v51 = vrot.slane %v1130_v13, %v4112_v18  ;;  %v1393_v13 = vsel %vm1374_vm9, %v1321_v62, %v1392_v56 }
 0x2ef   : > { %v1139_v15 = vpop.xlane.xlu1 %1138  ;;  %v1394_v11 = vsel %vm1376_vm10, %v1325_v35, %v1393_v13 }
 0x2f0   : > { %v1281_v30 = vrot.slane %v1139_v15, %v4112_v18 }
 0x2f1   : > { %v1190_v17 = vpop.xlane.xlu0 %1189 }
 0x2f2   : > { %v1349_v1 = vrot.slane %v1190_v17, %v4112_v18 }
 0x2f3   : > { %v1145_v14 = vpop.xlane.xlu1 %1144 }
 0x2f4   : > { %v1289_v59 = vrot.slane %v1145_v14, %v4112_v18  ;;  %v1357_v14 = vrot.slane %v4108_v12, %v4112_v18 }
 0x2f5   : > { %v4114_v19 = vpop.xlane.xlu0 %1174 }
 0x2f6   : > { %v1329_v5 = vrot.slane %v4114_v19, %v4112_v18 }
 0x2f7   : > { %v1148_v21 = vpop.xlane.xlu1 %1147 }
 0x2f8   : > { %v1293_v9 = vrot.slane %v1148_v21, %v4112_v18  ;;  %v1395_v21 = vsel %vm1378_vm11, %v1329_v5, %v1394_v11 }
 0x2f9   : > { %v1136_v24 = vpop.xlane.xlu0 %1135 }
 0x2fa   : > { %v1277_v27 = vrot.slane %v1136_v24, %v4112_v18  ;;  %v1333_v24 = vrot.slane %v4104_v8, %v4112_v18 }
 0x2fb   : > { %v4125_v31 = vpop.xlane.xlu1 %1198 }
 0x2fc   : > { %v1384_v39 = vsel %vm1370_vm7, %v1281_v30, %v1277_v27  ;;  %v1361_v12 = vrot.slane %v4125_v31, %v4112_v18  ;;  %v1396_v30 = vsel %vm1380_vm13, %v1333_v24, %v1395_v21 }
 0x2fd   : > { %v1127_v41 = vpop.xlane.xlu0 %1126  ;;  %v1385_v37 = vsel %vm1372_vm8, %v1285_v45, %v1384_v39 }
 0x2fe   : > { %v1265_v48 = vrot.slane %v1127_v41, %v4112_v18  ;;  %v1386_v4 = vsel %vm1374_vm9, %v1289_v59, %v1385_v37 }
 0x2ff   : > { %v1151_v53 = vpop.xlane.xlu1 %1150  ;;  %v1387_v15 = vsel %vm1376_vm10, %v1293_v9, %v1386_v4 }
 0x300   : > { %v1379_v58 = vsel %vm1378_vm11, %v1265_v48, %v1377_v50  ;;  %v1297_v2 = vrot.slane %v1151_v53, %v4112_v18 }
 0x301   : > { %v1187_v60 = vpop.xlane.xlu0 %1186  ;;  %v1381_v61 = vsel %vm1380_vm13, %v1269_v51, %v1379_v58 }
 0x302   : > { %v1345_v26 = vrot.slane %v1187_v60, %v4112_v18  ;;  %v1383_v29 = vsel %vm1382_vm12, %v1273_v55, %v1381_v61  ;;  %v1388_v19 = vsel %vm1378_vm11, %v1297_v2, %v1387_v15 }
 0x303   : > { %v1157_v7 = vpop.xlane.xlu1 %1156  ;;  %3422 = vmatprep.mubr.msk.f32.mxu1 %vm1405_vm6, %v1383_v29 }
 0x304   : > { %v1398_v10 = vsel %vm1370_vm7, %v1345_v26, %v1341_v63  ;;  %v1305_v20 = vrot.slane %v1157_v7, %v4112_v18 }
 0x305   : > { %v1399_v6 = vsel %vm1372_vm8, %v1349_v1, %v1398_v10  ;;  %v1154_v34 = vpop.xlane.xlu0 %1153 }
 0x306   : > { %v1400_v16 = vsel %vm1374_vm9, %v1353_v0, %v1399_v6  ;;  %v1301_v17 = vrot.slane %v1154_v34, %v4112_v18 }
 0x307   : > { %v1202_v23 = vpop.xlane.xlu1 %1201  ;;  %v1401_v25 = vsel %vm1376_vm10, %v1357_v14, %v1400_v16 }
 0x308   : > { %v1389_v22 = vsel %vm1380_vm13, %v1301_v17, %v1388_v19  ;;  %v1365_v28 = vrot.slane %v1202_v23, %v4112_v18  ;;  %v1402_v8 = vsel %vm1378_vm11, %v1361_v12, %v1401_v25  ;;  %v1720_v12 = vld [vmem:[#allocation4] sm:$0x1] }
 0x309   : > { %v1181_v47 = vpop.xlane.xlu0 %1180  ;;  %v1390_v52 = vsel %vm1382_vm12, %v1305_v20, %v1389_v22 }
 0x30a   : > { %v1337_v27 = vrot.slane %v1181_v47, %v4112_v18  ;;  %3423 = vmatmul.mubr.msk.f32.vlgmr.msra.gmra.mxu1 %vm1405_vm6, %v1390_v52  ;;  %v1403_v36 = vsel %vm1380_vm13, %v1365_v28, %v1402_v8 }
 0x30b   : > { %3439 = vmatpush3.xpose.msk.msra.mxu1 %vm1405_vm6, %v4070_v57 }
 0x30c   : > { %v1397_v32 = vsel %vm1382_vm12, %v1337_v27, %v1396_v30  ;;  %3440 = vmatprep.subr.msk.mxu1 %vm1405_vm6, %v4080_v54  ;;  %v1838_v30 = vpop.permute.xlu1 %1837 }
 0x30d   : > { %3425 = vmatprep.mubr.msk.f32.mxu1 %vm1405_vm6, %v1397_v32  ;;  %v1205_v31 = vpop.xlane.xlu0 %1204 }
 0x30e   : > { %v1369_v33 = vrot.slane %v1205_v31, %v4112_v18 }
 0x30f   : > { %3441 = vmatpush3.xpose.msk.msra.mxu1 %vm1405_vm6, %v4080_v54 }
 0x310   : > { %v1404_v39 = vsel %vm1382_vm12, %v1369_v33, %v1403_v36  ;;  %3456 = vmatprep.subr.bf16.mxu1 %v3728_v3  ;;  %v1765_v33 = vld [vmem:[#allocation3] sm:$0xff] }
 0x311   : > { %3426 = vmatmul.mubr.msk.f32.gmra.mxu1 %vm1405_vm6, %v1404_v39  ;;  %v1840_v19 = vpop.permute.xlu0 %1839 }
 0x31a   : > { %v1775_v23 = vpop.trf.xlu0 }
 0x3ca   : > { %v3424_v57 = vpop.f32.mrf.mxu1 }
 0x3cb   : > { %v1506_v41 = vsub.f32 %v3944_v44, %v3424_v57 }
 0x3cc   : > { %v1486_v43 = vpop.f32.mrf.mxu1 }
 0x3cd   : > { %v1505_v45 = vsub.f32 %v3936_v40, %v1486_v43  ;;  %v1511_v46 = vmul.f32 1.442695, %v1506_v41  ;;  %v1766_v41 = vld [vmem:[#allocation3 + $0x8] sm:$0xff] }
 0x3cf   : > { %v1509_v48 = vmul.f32 1.442695, %v1505_v45 }
 0x3d1   : > { %3637 = vpow2.f32 %v1509_v48  ;;  %v3427_v18 = vpop.f32.mrf.mxu1  ;;  %v1833_v48 = vld [vmem:[#allocation3 + $0x10] sm:$0xff] }
 0x3d2   : > { %3639 = vpow2.f32 %v1511_v46  ;;  %v1508_v50 = vsub.f32 %v3940_v42, %v3427_v18 }
 0x3d3   : > { %v1496_v54 = vpop.f32.mrf.mxu1 }
 0x3d4   : > { %v1507_v51 = vsub.f32 %v3934_v38, %v1496_v54  ;;  %v1515_v53 = vmul.f32 1.442695, %v1508_v50  ;;  %v1834_v54 = vld [vmem:[#allocation3 + $0x18] sm:$0xff] }
 0x3d6   : > { %v1513_v55 = vmul.f32 1.442695, %v1507_v51 }
 0x3d8   : > { %3641 = vpow2.f32 %v1513_v55 }
 0x3d9   : > { %3643 = vpow2.f32 %v1515_v53 }
 0x3de   : > { %v3638_v37 = vpop.eup %3637 }
 0x3df   : > { %v3640_v44 = vpop.eup %3639  ;;  %3432 = vmatprep.mubr.msk.f32.mxu0 %vm1517_vm14, %v3638_v37 }
 0x3e0   : > { %3433 = vmatmul.mubr.msk.f32.vlgmr.msra.gmra.mxu0 %vm1517_vm14, %v3640_v44 }
 0x3e5   : > { %v3642_v40 = vpop.eup %3641 }
 0x3e6   : > { %v3644_v58 = vpop.eup %3643  ;;  %3435 = vmatprep.mubr.msk.f32.mxu0 %vm1517_vm14, %v3642_v40 }
 0x3e7   : > { %3436 = vmatmul.mubr.msk.f32.gmra.mxu0 %vm1517_vm14, %v3644_v58 }
 0x3e8   : > { %3452 = vmatprep.mubr.msk.bf16.mxu0 %vm3730_vm0, %v3728_v3 }
 0x4a0   : > { %v3434_v42 = vpop.f32.mrf.mxu0 }
 0x4a2   : > { %v1596_v38 = vpop.f32.mrf.mxu0 }
 0x4a3   : > { %3442 = vmatprep.mubr.msk.f32.mxu1 %vm1405_vm6, %v1596_v38 }
 0x4a4   : > { %3443 = vmatmul.mubr.msk.f32.vlgmr.msra.gmra.mxu1 %vm1405_vm6, %v3434_v42 }
 0x4a7   : > { %v3437_v56 = vpop.f32.mrf.mxu0 }
 0x4a9   : > { %v1606_v59 = vpop.f32.mrf.mxu0 }
 0x4aa   : > { %3445 = vmatprep.mubr.msk.f32.mxu1 %vm1405_vm6, %v1606_v59 }
 0x4ab   : > { %3446 = vmatmul.mubr.msk.f32.gmra.mxu1 %vm1405_vm6, %v3437_v56 }
 0x4ac   : > { %3460 = vmatprep.mubr.msk.bf16.mxu1 %vm3730_vm0, %v3728_v3 }
 0x564   : > { %v3444_v60 = vpop.f32.mrf.mxu1 }
 0x565   : > { %3645 = vrcp.f32 %v3444_v60 }
 0x566   : > { %v1693_v61 = vpop.f32.mrf.mxu1 }
 0x567   : > { %3647 = vrcp.f32 %v1693_v61 }
 0x56b   : > { %v3447_v62 = vpop.f32.mrf.mxu1 }
 0x56c   : > { %3649 = vrcp.f32 %v3447_v62 }
 0x56d   : > { %v1703_v63 = vpop.f32.mrf.mxu1 }
 0x56e   : > { %3651 = vrcp.f32 %v1703_v63 }
 0x572   : > { %v3646_v26 = vpop.eup %3645 }
 0x573   : > { %v1717_v29 = vmul.f32 %v3646_v26, %v3640_v44 }
 0x574   : > { %v3648_v35 = vpop.eup %3647 }
 0x575   : > { %v1716_v1 = vmul.f32 %v3648_v35, %v3638_v37  ;;  %v3292_v2 = vpack.c.bf16 %v1717_v29, %v1717_v29  ;;  %v1722_v6 = vsel %vm1517_vm14, %v1717_v29, 0.0 }
 0x577   : > { %v1737_v4 = vpack.c.bf16 %v1717_v29, %v1716_v1  ;;  %v3291_v7 = vpack.c.bf16 %v1716_v1, %v1716_v1  ;;  %1762 = vst.msk [vmem:[%s1759_s16 + $0x4] sm:$0xf] %vm1760_vm15, %v3292_v2  ;;  %v1721_v5 = vsel %vm1517_vm14, %v1716_v1, 0.0 }
 0x578   : > { %v1723_v15 = vadd.f32 %v1722_v6, %v1721_v5 }
 0x579   : > { %v3650_v0 = vpop.eup %3649  ;;  %1761 = vst.msk [vmem:[%s1759_s16] sm:$0xf] %vm1760_vm15, %v3291_v7  ;;  %1859 = vrot.lane.b32.xlu1 %v1737_v4, %s3725_s18 }
 0x57a   : > { %v1719_v9 = vmul.f32 %v3650_v0, %v3644_v58 }
 0x57b   : > { %v3652_v10 = vpop.eup %3651 }
 0x57c   : > { %v1718_v34 = vmul.f32 %v3652_v10, %v3642_v40  ;;  %v3294_v13 = vpack.c.bf16 %v1719_v9, %v1719_v9  ;;  %v1726_v20 = vsel %vm1517_vm14, %v1719_v9, 0.0 }
 0x57e   : > { %v1724_v16 = vsel %vm1517_vm14, %v1718_v34, 0.0  ;;  %v1738_v17 = vpack.c.bf16 %v1719_v9, %v1718_v34  ;;  %v3293_v11 = vpack.c.bf16 %v1718_v34, %v1718_v34  ;;  %1764 = vst.msk [vmem:[%s1759_s16 + $0xc] sm:$0xf] %vm1760_vm15, %v3294_v13 }
 0x57f   : > { %v1725_v14 = vadd.f32 %v1724_v16, %v1723_v15 }
 0x580   : > { %1763 = vst.msk [vmem:[%s1759_s16 + $0x8] sm:$0xf] %vm1760_vm15, %v3293_v11  ;;  %3449 = vmatpush3.bf16.msra.mxu0 %v1738_v17  ;;  %1861 = vrot.lane.b32.xlu1 %v1738_v17, %s3725_s18  ;;  %s4401_s16 = smov (!%p3255_p11), %s4400_s14 }
 0x581   : > { %v1727_v21 = vadd.f32 %v1726_v20, %v1725_v14  ;;  %3450 = vmatprep.subr.bf16.mxu0 %v3728_v3 }
 0x583   : > { %v1728_v22 = vrot.slane %v1727_v21, 4 }
 0x584   : > { %3451 = vmatpush3.bf16.msra.mxu0 %v1737_v4 }
 0x585   : > { %v1729_v24 = vadd.f32 %v1728_v22, %v1727_v21 }
 0x587   : > { %v1730_v25 = vrot.slane %v1729_v24, 2  ;;  %3453 = vmatmul.mubr.msk.bf16.vlgmr.msra.gmra.mxu0 %vm773_vm4, %v1775_v23 }
 0x589   : > { %v1731_v47 = vadd.f32 %v1730_v25, %v1729_v24 }
 0x58b   : > { %v1732_v52 = vrot.slane %v1731_v47, 1 }
 0x58d   : > { %v1733_v27 = vadd.f32 %v1732_v52, %v1731_v47 }
 0x58f   : > { %v1734_v28 = vadd.f32 %v1733_v27, %v1720_v12 }
 0x591   : > { %1736 = vst.msk [vmem:[#allocation4] sm:$0x1] %vm1735_vm1, %v1734_v28 }
 0x5a3   : > { %1843 = vxpose.xlu1.c.b16.start [1/2] (short) (narrow) %v1838_v30, 16 }
 0x5a7   : > { %1844 = vxpose.xlu1.c.b16.end [2/2] (short) (narrow) %v1840_v19, 16 }
 0x5eb   : > { %v1860_v8 = vpop.permute.xlu1 %1859 }
 0x5f2   : > { %v1862_v32 = vpop.permute.xlu1 %1861 }
 0x5f3   : > { %3457 = vmatpush3.bf16.msra.mxu1 %v1862_v32 }
 0x5f4   : > { %3458 = vmatprep.subr.bf16.mxu1 %v3728_v3 }
 0x5f7   : > { %3459 = vmatpush3.bf16.msra.mxu1 %v1860_v8 }
 0x605   : > { %v1851_v31 = vpop.trf.xlu1 }
 0x606   : > { %3461 = vmatmul.mubr.msk.bf16.vlgmr.msra.gmra.mxu1 %vm773_vm4, %v1851_v31 }
 0x647   : > { %v1820_v36 = vpop.f32.mrf.mxu0 }
 0x648   : > { %v1827_v39 = vadd.f32 %v1820_v36, %v1765_v33 }
 0x649   : > { %v3454_v57 = vpop.f32.mrf.mxu0 }
 0x64a   : > { %1830 = vst.msk [vmem:[#allocation3] sm:$0xff] %vm1829_vm2, %v1827_v39 }
 0x64b   : > { %v1823_v43 = vpop.f32.mrf.mxu0 }
 0x64c   : > { %v1828_v45 = vadd.f32 %v1823_v43, %v1766_v41 }
 0x64d   : > { %v3455_v46 = vpop.f32.mrf.mxu0 }
 0x64e   : > { %1831 = vst.msk [vmem:[#allocation3 + $0x8] sm:$0xff] %vm1829_vm2, %v1828_v45 }
 0x6c6   : > { %v1902_v18 = vpop.f32.mrf.mxu1 }
 0x6c7   : > { %v1909_v3 = vadd.f32 %v1902_v18, %v1833_v48 }
 0x6c8   : > { %v3462_v50 = vpop.f32.mrf.mxu1 }
 0x6c9   : > { %1911 = vst.msk [vmem:[#allocation3 + $0x10] sm:$0xff] %vm1829_vm2, %v1909_v3  ;;  %1916 = sbr.rel (%p3255_p11) target bundleno = 4007 (0xfa7), region = 84 }
 0x6ca   : > { %v1905_v51 = vpop.f32.mrf.mxu1 }
 0x6cb   : > { %v1910_v53 = vadd.f32 %v1905_v51, %v1834_v54 }
 0x6cc   : > { %v3463_v55 = vpop.f32.mrf.mxu1 }
 0x6cd   : > { %1912 = vst.msk [vmem:[#allocation3 + $0x18] sm:$0xff] %vm1829_vm2, %v1910_v53 }
 0x6ce   : > { %v1917_v37 = vld [vmem:[#allocation4] sm:$0x1]  ;;  %v1926_v42 = vsub.s32 0, %v3951_v49  ;;  %v1919_v56 = vld [vmem:[#allocation3 + $0x8] sm:$0xff]  ;;  %v3731_v29 = vmov 0.0   ;;  %vm3732_vm3 = vmmov 0  }
 0x6cf   : > { %v1920_v44 = vadd.f32 1e-05, %v1917_v37  ;;  %v4234_v40 = vld [vmem:[%s4380_s8] sm:$0xff]  ;;  %v4251_v63 = vld [vmem:[%s4380_s8 + $0x8] sm:$0xff]  ;;  %vm2452_vm4 = vcmask 60416  }
 0x6d0   : > { %v4239_v58 = vld [vmem:[%s4381_s9] sm:$0xff]  ;;  %3468 = vmatprep.mubr.msk.f32.mxu0 %vm1517_vm14, %v4234_v40  ;;  %v4256_v26 = vld [vmem:[%s4381_s9 + $0x8] sm:$0xff]  ;;  %v2455_v27 = vld [vmem:[#allocation3 + $0x10] sm:$0xff] }
 0x6d1   : > { %3475 = vmatprep.mubr.msk.f32.mxu1 %vm1517_vm14, %v4239_v58  ;;  %3653 = vrcp.f32 %v1920_v44  ;;  %v1918_v59 = vld [vmem:[#allocation3] sm:$0xff]  ;;  %v4279_v5 = vld [vmem:[%s4382_s10 + $0x8] sm:$0xff] }
 0x6d2   : > { %v4274_v0 = vld [vmem:[%s4382_s10] sm:$0xff]  ;;  %v2377_v22 = vld [vmem:[%s4400_s14 + $0x8] sm:$0xff] }
 0x6d3   : > { %v2454_v20 = vld [vmem:[#allocation4] sm:$0x1] }
 0x6d4   : > { %v2457_v21 = vadd.f32 1e-05, %v2454_v20  ;;  %v2376_v23 = vld [vmem:[%s4401_s16] sm:$0xff]  ;;  %v2456_v28 = vld [vmem:[#allocation3 + $0x18] sm:$0xff] }
 0x6de   : > { %v3654_v38 = vpop.eup %3653 }
 0x6df   : > { %v1927_v60 = vrot.slane %v3654_v38, %v1926_v42 }
 0x6e1   : > { %v1930_v61 = vmul.f32 %v1927_v60, %v1919_v56  ;;  %v1929_v62 = vmul.f32 %v1927_v60, %v1918_v59 }
 0x6e3   : > { %3464 = vmatprep.subr.mxu0 %v1930_v61  ;;  %3471 = vmatprep.subr.mxu1 %v1930_v61 }
 0x6e4   : > { %3465 = vmatpush3.msra.mxu0 %v1930_v61  ;;  %3472 = vmatpush3.msra.mxu1 %v1930_v61 }
 0x6e5   : > { %3466 = vmatprep.subr.mxu0 %v1929_v62  ;;  %3473 = vmatprep.subr.mxu1 %v1929_v62 }
 0x6e6   : > { %3467 = vmatpush3.msra.mxu0 %v1929_v62  ;;  %3474 = vmatpush3.msra.mxu1 %v1929_v62 }
 0x6e7   : > { %3469 = vmatmul.mubr.msk.f32.vlgmr.msra.gmra.mxu0 %vm1517_vm14, %v4251_v63  ;;  %3476 = vmatmul.mubr.msk.f32.vlgmr.msra.gmra.mxu1 %vm1517_vm14, %v4256_v26 }
 0x6e8   : > { %3478 = vmatprep.subr.mxu0 %v1930_v61  ;;  %3485 = vmatprep.subr.mxu1 %v3731_v29 }
 0x6e9   : > { %3479 = vmatpush3.msra.mxu0 %v1930_v61  ;;  %3489 = vmatprep.mubr.msk.f32.mxu1 %vm3732_vm3, %v3731_v29 }
 0x6ea   : > { %3480 = vmatprep.subr.mxu0 %v1929_v62  ;;  %3482 = vmatprep.mubr.msk.f32.mxu0 %vm1517_vm14, %v4274_v0 }
 0x6eb   : > { %3481 = vmatpush3.msra.mxu0 %v1929_v62 }
 0x6ec   : > { %3492 = vmatprep.subr.mxu0 %v3731_v29  ;;  %3483 = vmatmul.mubr.msk.f32.vlgmr.msra.gmra.mxu0 %vm1517_vm14, %v4279_v5 }
 0x6ed   : > { %3496 = vmatprep.mubr.msk.f32.mxu0 %vm3732_vm3, %v3731_v29 }
 0x7a7   : > { %v3470_v35 = vpop.f32.mrf.mxu0  ;;  %v3477_v1 = vpop.f32.mrf.mxu1 }
 0x7a8   : > { %3486 = vmatpush3.msra.mxu1 %v3477_v1 }
 0x7a9   : > { %v2005_v2 = vpop.f32.mrf.mxu0  ;;  %v2088_v4 = vpop.f32.mrf.mxu1  ;;  %3487 = vmatprep.subr.mxu1 %v3731_v29 }
 0x7aa   : > { %2180 = vxpose.xlu0.b32.start [1/2] (short) (narrow) %v2005_v2, 8  ;;  %3488 = vmatpush3.msra.mxu1 %v2088_v4 }
 0x7ab   : > { %3499 = vmatprep.subr.mxu1 %v3731_v29 }
 0x7ac   : > { %v3484_v14 = vpop.f32.mrf.mxu0 }
 0x7ad   : > { %3493 = vmatpush3.xpose.msk.msra.mxu0 %vm1829_vm2, %v3484_v14 }
 0x7ae   : > { %2181 = vxpose.xlu0.b32.end [2/2] (short) (narrow) %v3470_v35, 8  ;;  %v2171_v19 = vpop.f32.mrf.mxu0  ;;  %3494 = vmatprep.subr.mxu0 %v3731_v29 }
 0x7b1   : > { %3495 = vmatpush3.xpose.msk.msra.mxu0 %vm1829_vm2, %v2171_v19 }
 0x826   : > { %v2196_v7 = vpop.trf.xlu0 }
 0x827   : > { %3490 = vmatmul.mubr.msk.f32.vlgmr.msra.gmra.mxu1 %vm1517_vm14, %v2196_v7 }
 0x828   : > { %3503 = vmatprep.mubr.msk.f32.mxu1 %vm3732_vm3, %v3731_v29  ;;  %3500 = vmatpush3.msra.mxu1 %v2377_v22 }
 0x829   : > { %3501 = vmatprep.subr.mxu1 %v3731_v29 }
 0x82a   : > { %3502 = vmatpush3.msra.mxu1 %v2376_v23 }
 0x8e7   : > { %v2281_v9 = vpop.f32.mrf.mxu1 }
 0x8e8   : > { %v2285_v10 = vmul.f32 0.25, %v2281_v9 }
 0x8e9   : > { %v3491_v6 = vpop.f32.mrf.mxu1 }
 0x8ea   : > { %v2286_v34 = vsel %vm1829_vm2, %v2285_v10, -inf }
 0x8eb   : > { %2287 = vmax.xlane.f32.xlu1 %v2286_v34 }
 0x974   : > { %v2288_v13 = vpop.xlane.xlu1 %2287 }
 0x975   : > { %v2289_v15 = vsub.f32 %v2285_v10, %v2288_v13 }
 0x977   : > { %v2290_v16 = vmul.f32 1.442695, %v2289_v15 }
 0x979   : > { %3655 = vpow2.f32 %v2290_v16 }
 0x97a   : > { %3657 = vrcp.f32 %v2457_v21 }
 0x986   : > { %v3656_v17 = vpop.eup %3655 }
 0x987   : > { %v2292_v11 = vsel %vm1829_vm2, %v3656_v17, 0.0  ;;  %v3658_v24 = vpop.eup %3657 }
 0x988   : > { %2293 = vadd.xlane.f32.xlu1 %v2292_v11  ;;  %v2464_v25 = vrot.slane %v3658_v24, %v1926_v42  ;;  %v3277_v42 = vld [vmem:[%s4401_s16 + $0x10] sm:$0xff] }
 0x98a   : > { %2465 = vrot.lane.b32.xlu0 %v2464_v25, %s3733_s21 }
 0x9fc   : > { %v2466_v30 = vpop.permute.xlu0 %2465 }
 0x9fd   : > { %v2468_v8 = vmul.f32 %v2466_v30, %v2455_v27  ;;  %v2469_v32 = vmul.f32 %v2466_v30, %v2456_v28 }
 0x9ff   : > { %3513 = vmatprep.subr.mxu0 %v2469_v32  ;;  %3506 = vmatprep.subr.mxu1 %v2469_v32 }
 0xa11   : > { %v2294_v47 = vpop.xlane.xlu1 %2293 }
 0xa12   : > { %3659 = vrcp.f32 %v2294_v47 }
 0xa1f   : > { %v3660_v52 = vpop.eup %3659 }
 0xa20   : > { %v2296_v12 = vmul.f32 %v3660_v52, %v3656_v17 }
 0xa22   : > { %3497 = vmatmul.mubr.msk.f32.vlgmr.msra.gmra.mxu0 %vm1829_vm2, %v2296_v12 }
 0xa23   : > { %3517 = vmatprep.mubr.msk.f32.mxu0 %vm1517_vm14, %v4239_v58  ;;  %3514 = vmatpush3.msra.mxu0 %v2469_v32  ;;  %v3278_v58 = vld [vmem:[%s4401_s16 + $0x18] sm:$0xff] }
 0xa24   : > { %3515 = vmatprep.subr.mxu0 %v2468_v8 }
 0xa25   : > { %3516 = vmatpush3.msra.mxu0 %v2468_v8 }
 0xa26   : > { %3518 = vmatmul.mubr.msk.f32.vlgmr.msra.gmra.mxu0 %vm1517_vm14, %v4256_v26  ;;  %3527 = vmatprep.subr.mxu0 %v3731_v29 }
 0xa27   : > { %3531 = vmatprep.mubr.msk.f32.mxu0 %vm3732_vm3, %v3731_v29 }
 0xae2   : > { %v2372_v49 = vpop.f32.mrf.mxu0 }
 0xae3   : > { %3504 = vmatmul.mubr.msk.f32.vlgmr.msra.gmra.mxu1 %vm1517_vm14, %v2372_v49 }
 0xae4   : > { %3507 = vmatpush3.msra.mxu1 %v2469_v32  ;;  %v3498_v31 = vpop.f32.mrf.mxu0  ;;  %3510 = vmatprep.mubr.msk.f32.mxu1 %vm1517_vm14, %v4234_v40 }
 0xae5   : > { %3508 = vmatprep.subr.mxu1 %v2468_v8 }
 0xae6   : > { %3509 = vmatpush3.msra.mxu1 %v2468_v8  ;;  %v3519_v33 = vpop.f32.mrf.mxu0 }
 0xae7   : > { %3520 = vmatprep.subr.mxu1 %v2469_v32  ;;  %3511 = vmatmul.mubr.msk.f32.vlgmr.msra.gmra.mxu1 %vm1517_vm14, %v4251_v63 }
 0xae8   : > { %3521 = vmatpush3.msra.mxu1 %v2469_v32  ;;  %3524 = vmatprep.mubr.msk.f32.mxu1 %vm1517_vm14, %v4274_v0  ;;  %v2627_v36 = vpop.f32.mrf.mxu0 }
 0xae9   : > { %3522 = vmatprep.subr.mxu1 %v2468_v8  ;;  %3528 = vmatpush3.msra.mxu0 %v3519_v33 }
 0xaea   : > { %3523 = vmatpush3.msra.mxu1 %v2468_v8  ;;  %3529 = vmatprep.subr.mxu0 %v3731_v29 }
 0xaeb   : > { %3525 = vmatmul.mubr.msk.f32.vlgmr.msra.gmra.mxu1 %vm1517_vm14, %v4279_v5  ;;  %3534 = vmatprep.subr.mxu1 %v3731_v29 }
 0xaec   : > { %3538 = vmatprep.mubr.msk.f32.mxu1 %vm3732_vm3, %v3731_v29  ;;  %3530 = vmatpush3.msra.mxu0 %v2627_v36 }
 0xaed   : > { %3541 = vmatprep.subr.mxu0 %v3731_v29 }
 0xba3   : > { %v2447_v39 = vpop.f32.mrf.mxu1 }
 0xba4   : > { %v2451_v57 = vpack.c.bf16 %v2447_v39, %v2447_v39 }
 0xba5   : > { %v3505_v41 = vpop.f32.mrf.mxu1 }
 0xba6   : > { %2453 = vst.msk [vmem:[#allocation5] sm:$0xf] %vm2452_vm4, %v2451_v57 }
 0xba7   : > { %v3512_v43 = vpop.f32.mrf.mxu1 }
 0xba9   : > { %v2544_v45 = vpop.f32.mrf.mxu1 }
 0xbaa   : > { %2719 = vxpose.xlu1.b32.start [1/2] (short) (narrow) %v2544_v45, 8 }
 0xbab   : > { %v3526_v44 = vpop.f32.mrf.mxu1 }
 0xbac   : > { %3535 = vmatpush3.xpose.msk.msra.mxu1 %vm1829_vm2, %v3526_v44 }
 0xbad   : > { %v2710_v40 = vpop.f32.mrf.mxu1  ;;  %3536 = vmatprep.subr.mxu1 %v3731_v29 }
 0xbae   : > { %2720 = vxpose.xlu1.b32.end [2/2] (short) (narrow) %v3512_v43, 8 }
 0xbb0   : > { %3537 = vmatpush3.xpose.msk.msra.mxu1 %vm1829_vm2, %v2710_v40 }
 0xc26   : > { %v2735_v46 = vpop.trf.xlu1 }
 0xc27   : > { %3532 = vmatmul.mubr.msk.f32.vlgmr.msra.gmra.mxu0 %vm1517_vm14, %v2735_v46 }
 0xc28   : > { %3545 = vmatprep.mubr.msk.f32.mxu0 %vm3732_vm3, %v3731_v29  ;;  %3542 = vmatpush3.msra.mxu0 %v3278_v58 }
 0xc29   : > { %3543 = vmatprep.subr.mxu0 %v3731_v29 }
 0xc2a   : > { %3544 = vmatpush3.msra.mxu0 %v3277_v42 }
 0xce7   : > { %v2820_v48 = vpop.f32.mrf.mxu0 }
 0xce8   : > { %v2824_v18 = vmul.f32 0.25, %v2820_v48 }
 0xce9   : > { %v3533_v3 = vpop.f32.mrf.mxu0 }
 0xcea   : > { %v2825_v50 = vsel %vm1829_vm2, %v2824_v18, -inf }
 0xceb   : > { %2826 = vmax.xlane.f32.xlu0 %v2825_v50 }
 0xd74   : > { %v2827_v54 = vpop.xlane.xlu0 %2826 }
 0xd75   : > { %v2828_v51 = vsub.f32 %v2824_v18, %v2827_v54 }
 0xd77   : > { %v2829_v53 = vmul.f32 1.442695, %v2828_v51 }
 0xd79   : > { %3661 = vpow2.f32 %v2829_v53 }
 0xd86   : > { %v3662_v55 = vpop.eup %3661 }
 0xd87   : > { %v2831_v37 = vsel %vm1829_vm2, %v3662_v55, 0.0 }
 0xd88   : > { %2832 = vadd.xlane.f32.xlu1 %v2831_v37 }
 0xe11   : > { %v2833_v38 = vpop.xlane.xlu1 %2832 }
 0xe12   : > { %3663 = vrcp.f32 %v2833_v38 }
 0xe1f   : > { %v3664_v56 = vpop.eup %3663 }
 0xe20   : > { %v2835_v59 = vmul.f32 %v3664_v56, %v3662_v55 }
 0xe22   : > { %3539 = vmatmul.mubr.msk.f32.vlgmr.msra.gmra.mxu1 %vm1829_vm2, %v2835_v59 }
 0xee2   : > { %v2911_v60 = vpop.f32.mrf.mxu1 }
 0xee3   : > { %3546 = vmatmul.mubr.msk.f32.vlgmr.msra.gmra.mxu0 %vm1517_vm14, %v2911_v60 }
 0xee4   : > { %v3540_v61 = vpop.f32.mrf.mxu1 }
 0xfa3   : > { %v2987_v62 = vpop.f32.mrf.mxu0 }
 0xfa4   : > { %v2991_v63 = vpack.c.bf16 %v2987_v62, %v2987_v62 }
 0xfa5   : > { %v3547_v26 = vpop.f32.mrf.mxu0 }
 0xfa6   : > { %2992 = vst.msk [vmem:[#allocation5 + $0x4] sm:$0xf] %vm2452_vm4, %v2991_v63 }
 0xfa7 PF: > { %p3280_p12 = scmp.ne.s32.totalorder %s3702_s26, 1 }
 0xfa8   : > { %s3281_s27 = sshll.u32 (!%p3280_p12), %s3698_s25, 5  ;;  %s4402_s30 = sld [smem:[#allocation14_spill]] (!%p3280_p12) }
 0xfa9   : > { %2996 = sbr.rel (%p3280_p12) target bundleno = 4221 (0x107d), region = 88  ;;  %s2998_s11 = sshra.s32 (!%p3280_p12), %s3281_s27, 3 }
 0xfaa   : > { %s3282_s12 = sshll.u32 (!%p3280_p12), %s2998_s11, 2 }
 0xfab   : > { %s3001_s28 = scalar_lea.vmem (!%p3280_p12), [#allocation2], %s3282_s12 }
 0xfae   : > { %v3665_v29 = vld [vmem:[#allocation5] sm:$0xff]   ;;  %vm3031_vm5 = vcmask 130048   ;;  %v3283_v2 = vld [vmem:[%s4402_s30] ss:$0 sm:$0xff]  ;;  %vm3087_vm6 = vcmask 64512  }
 0xfaf   : > { %3548 = vmatprep.subr.bf16.mxu0 %v3665_v29  ;;  %v3666_v35 = vld [vmem:[%s3001_s28] sm:$0xff]   ;;  %v3667_v1 = vld [vmem:[%s3001_s28 + $0x8] sm:$0xff]  }
 0xfb0   : > { %3549 = vmatpush3.bf16.msra.mxu0 %v3665_v29  ;;  %3550 = vmatprep.mubr.msk.bf16.mxu0 %vm3031_vm5, %v3666_v35 }
 0xfb3   : > { %3551 = vmatmul.mubr.msk.bf16.vlgmr.msra.gmra.mxu0 %vm3031_vm5, %v3667_v1 }
0x1073   : > { %v3552_v4 = vpop.f32.mrf.mxu0 }
0x1074   : > { %v3081_v7 = vadd.f32 %v3552_v4, %v3283_v2 }
0x1075   : > { %v3072_v0 = vpop.f32.mrf.mxu0 }
0x1076   : > { %3090 = vst.msk [vmem:[%s3863_s19 + $0x10] sm:$0xff] %vm3087_vm6, %v3081_v7  ;;  %v3073_v5 = vadd.f32 %v3283_v2, %v3072_v0 }
0x1077   : > { %v3553_v9 = vpop.f32.mrf.mxu0 }
0x1078   : > { %3088 = vst.msk [vmem:[%s3863_s19] sm:$0xff] %vm3087_vm6, %v3073_v5  ;;  %v3084_v10 = vadd.f32 %v3553_v9, %v3283_v2 }
0x1079   : > { %v3075_v6 = vpop.f32.mrf.mxu0 }
0x107a   : > { %3091 = vst.msk [vmem:[%s3863_s19 + $0x18] sm:$0xff] %vm3087_vm6, %v3084_v10  ;;  %v3076_v34 = vadd.f32 %v3283_v2, %v3075_v6 }
0x107c   : > { %3089 = vst.msk [vmem:[%s3863_s19 + $0x8] sm:$0xff] %vm3087_vm6, %v3076_v34 }
0x107d PF: > { %s4403_s25 = sld [smem:[#allocation9_spill]] }
0x107e   : > { %s4405_s26 = sld [smem:[#allocation7_spill]] }
0x107f   : > { %s4406_s27 = sld [smem:[#allocation8_spill]] }
0x1080   : > { %s4407_s28 = sld [smem:[#allocation10_spill]] }
0x1081   : > { %s4408_s29 = sld [smem:[#allocation11_spill]] }
0x1082   : > { %s4409_s30 = sld [smem:[#allocation12_spill]] }
0x1083   : > { %s23_s14 = sadd.s32 1, %s4403_s25   ;;  %s4404_s25 = sld [smem:[#allocation6_spill]] }
0x1084   : > { %p20_p13 = scmp.ge.s32.totalorder %s23_s14, 18  }
0x1086   :  { %22 = sbr.rel (!%p20_p13) target bundleno = 5 (0x5), region = 122 }

</bundles_post_ra>
